<compile_context>
chip_gen: v5e
topology: v5e:2x2
jax: 0.10.0
libtpu: 0.0.40
codegen_flags: <defaults>
</compile_context>

<pallas_src>
import functools

import jax
import jax.numpy as jnp
from jax.experimental import pallas as pl
from jax.experimental.pallas import tpu as pltpu

_HAS_BUFFERED = hasattr(pl, "Buffered")


def _layer_norm(x, gamma, beta, eps=1e-5):
    # x: (tS, D) f32; gamma/beta: (1, D) f32.  LN math entirely in f32.
    mean = jnp.mean(x, axis=-1, keepdims=True)
    var = jnp.mean((x - mean) ** 2, axis=-1, keepdims=True)
    inv = jax.lax.rsqrt(var + eps)
    return (x - mean) * inv * gamma + beta


def encoder_kernel(
    x_ref,                      # (1, S, D)  f32  (full sequence; resident across qi)
    wq_ref, bq_ref,             # (D, D)  bf16 (1/sqrt(dh) folded), (1, D) f32 (folded)
    wkv_ref, bkv_ref,           # (D, 2D) bf16, (1, 2D) f32
    wo_ref, bo_ref,             # (D, D)  bf16, (1, D)  f32
    g_attn_ref, b_attn_ref,     # (1, D) f32
    w1_ref, b1_ref,             # (D, F)  bf16, (1, F)  f32
    w2_ref, b2_ref,             # (F, D)  bf16, (1, D)  f32
    g_ffn_ref, b_ffn_ref,       # (1, D) f32
    o_ref,                      # (1, tS, D) f32
    k_scr, v_scr,               # (H, S, dh) bf16 scratch, carried across qi
    *, num_head: int, q_tile: int,
):
    S, D = x_ref.shape[1], x_ref.shape[2]
    H = num_head
    dh = D // H

    qi = pl.program_id(1)

    # ---- K/V: projected + head-relayouted ONCE per batch element -----------
    # (qi is the innermost 'arbitrary' axis, so the scratch legally carries
    # across query tiles; the relayout cost is amortized over all q tiles.)
    @pl.when(qi == 0)
    def _():
        x_bf = x_ref[0].astype(jnp.bfloat16)                      # (S, D)
        kv = jnp.dot(x_bf, wkv_ref[...],
                     preferred_element_type=jnp.float32) + bkv_ref[...]   # (S, 2D) f32
        k = kv[:, :D]
        v = kv[:, D:]
        k_scr[...] = jnp.transpose(k.reshape(S, H, dh), (1, 0, 2)).astype(jnp.bfloat16)
        v_scr[...] = jnp.transpose(v.reshape(S, H, dh), (1, 0, 2)).astype(jnp.bfloat16)

    # ---- Q: projected only for the current query tile ----------------------
    if q_tile == S:
        x_q = x_ref[0]                                            # (S, D) f32
    else:
        q_start = pl.multiple_of(qi * q_tile, q_tile)
        x_q = x_ref[0, pl.ds(q_start, q_tile), :]                 # (tS, D) f32
    q = jnp.dot(x_q.astype(jnp.bfloat16), wq_ref[...],
                preferred_element_type=jnp.float32) + bq_ref[...]
    qh = jnp.transpose(q.reshape(q_tile, H, dh), (1, 0, 2)).astype(jnp.bfloat16)

    # ---- Head-batched attention --------------------------------------------
    # TODO(synk): pad/group heads so dh >= 128 for full MXU contraction depth
    #             and lane-dense (non-masked) PV/ctx stores.
    scores = jnp.einsum('hqd,hkd->hqk', qh, k_scr[...],
                        preferred_element_type=jnp.float32)       # (H, tS, S) f32
    scores = scores - jnp.max(scores, axis=-1, keepdims=True)
    p = jnp.exp(scores)
    p = p * pl.reciprocal(jnp.sum(p, axis=-1, keepdims=True), approx=True)

    ctx = jnp.einsum('hqk,hkd->hqd', p.astype(jnp.bfloat16), v_scr[...],
                     preferred_element_type=jnp.float32)          # (H, tS, dh) f32
    attn = jnp.transpose(ctx, (1, 0, 2)).reshape(q_tile, D)       # (tS, D)
    attn = jnp.dot(attn.astype(jnp.bfloat16), wo_ref[...],
                   preferred_element_type=jnp.float32) + bo_ref[...]

    # dropout -> identity (eval)
    h1 = _layer_norm(x_q + attn, g_attn_ref[...], b_attn_ref[...])

    # ---- FFN: Linear -> ReLU -> Linear -> ReLU (matches reference module) ---
    f = jnp.dot(h1.astype(jnp.bfloat16), w1_ref[...],
                preferred_element_type=jnp.float32) + b1_ref[...]
    f = jnp.maximum(f, 0.0)
    f = jnp.dot(f.astype(jnp.bfloat16), w2_ref[...],
                preferred_element_type=jnp.float32) + b2_ref[...]
    f = jnp.maximum(f, 0.0)

    # dropout -> identity (eval)
    out = _layer_norm(h1 + f, g_ffn_ref[...], b_ffn_ref[...])
    o_ref[0] = out.astype(o_ref.dtype)


def _vmem_limit_bytes():
    # Generation-aware VMEM budget: ~80% of physical per-core VMEM
    # (v5e/v6e: 128 MiB -> ~102 MiB; v7x: 64 MiB -> ~51 MiB).
    try:
        cap = int(pltpu.get_tpu_info().vmem_capacity_bytes)
        return max(32 * 1024 * 1024, int(cap * 0.8))
    except Exception:
        return 48 * 1024 * 1024          # conservative: safe on every generation


def _default_q_tile(seq_len, vmem_bytes):
    # Keep the MXU M-dim at >= 256 where possible (v6e/v7x MXU is 256 deep);
    # smaller VMEM budget (v7x) -> smaller resident (H, tS, S) score block.
    if vmem_bytes <= 56 * 1024 * 1024:
        return seq_len if seq_len <= 256 else 256
    return seq_len if seq_len <= 512 else 512


def prepare_params(params, num_head):
    """One-time parameter preparation (call at init, NOT per forward step):
    fold 1/sqrt(dh) into the Q projection, fuse wk/wv into one (D, 2D) weight,
    and cast all matmul weights to bf16."""
    D = params["wq"].shape[0]
    dh = D // num_head
    scale = 1.0 / (dh ** 0.5)
    return {
        "wq": (params["wq"] * scale).astype(jnp.bfloat16),
        "bq": (params["bq"] * scale).astype(jnp.float32),
        "wkv": jnp.concatenate([params["wk"], params["wv"]], axis=1).astype(jnp.bfloat16),
        "bkv": jnp.concatenate([params["bk"], params["bv"]], axis=1).astype(jnp.float32),
        "wo": params["wo"].astype(jnp.bfloat16),
        "bo": params["bo"],
        "g_attn": params["g_attn"], "b_attn": params["b_attn"],
        "w1": params["w1"].astype(jnp.bfloat16), "b1": params["b1"],
        "w2": params["w2"].astype(jnp.bfloat16), "b2": params["b2"],
        "g_ffn": params["g_ffn"], "b_ffn": params["b_ffn"],
    }


def encoder_forward(x, kparams, num_head, *, q_tile=None):
    B, S, D = x.shape
    F_dim = kparams["w1"].shape[1]
    H = num_head
    dh = D // H

    vmem_bytes = _vmem_limit_bytes()
    if q_tile is None:
        q_tile = _default_q_tile(S, vmem_bytes)
        if S % q_tile != 0:
            q_tile = S                      # fall back to a single tile for odd S
    assert S % q_tile == 0, "q_tile must divide S"
    if q_tile != S:
        assert q_tile % 8 == 0, "partial query tiles must be sublane-aligned"
    n_q = S // q_tile

    # Corrected cost estimate: K/V projected once, Q/attention/FFN per tile.
    flops = 2 * B * (4 * S * D * D + 2 * S * S * D + 2 * S * D * F_dim)
    bytes_accessed = (
        2 * B * S * D * 4                               # x in + out (f32)
        + (4 * D * D + 2 * D * F_dim) * 2               # bf16 weights (fetched once)
        + (3 * D + 2 * D + F_dim + 4 * D) * 4           # f32 biases + LN params
    )
    cost = pl.CostEstimate(flops=flops,
                           transcendentals=B * H * S * S,
                           bytes_accessed=bytes_accessed)

    kernel = functools.partial(encoder_kernel, num_head=H, q_tile=q_tile)

    def run(single_buffer_consts):
        if single_buffer_consts:
            def const_spec(shape):
                # Constant block index -> single-buffer (halves resident weight VMEM).
                return pl.BlockSpec(shape, lambda b, qi: (0, 0),
                                    pipeline_mode=pl.Buffered(1))
        else:
            def const_spec(shape):
                return pl.BlockSpec(shape, lambda b, qi: (0, 0))

        in_specs = [
            # Full-sequence x: block index is constant in qi (qi innermost), so
            # the (1, S, D) block is DMA'd once per batch element, not per tile.
            pl.BlockSpec((1, S, D), lambda b, qi: (b, 0, 0)),
            const_spec((D, D)), const_spec((1, D)),           # wq, bq (scale folded)
            const_spec((D, 2 * D)), const_spec((1, 2 * D)),   # wkv, bkv
            const_spec((D, D)), const_spec((1, D)),           # wo, bo
            const_spec((1, D)), const_spec((1, D)),           # ln_attn gamma, beta
            const_spec((D, F_dim)), const_spec((1, F_dim)),   # w1, b1
            const_spec((F_dim, D)), const_spec((1, D)),       # w2, b2
            const_spec((1, D)), const_spec((1, D)),           # ln_ffn gamma, beta
        ]

        return pl.pallas_call(
            kernel,
            out_shape=jax.ShapeDtypeStruct((B, S, D), jnp.float32),
            grid_spec=pltpu.PrefetchScalarGridSpec(
                num_scalar_prefetch=0,
                grid=(B, n_q),                 # qi innermost (fastest-varying)
                in_specs=in_specs,
                out_specs=pl.BlockSpec((1, q_tile, D), lambda b, qi: (b, qi, 0)),
                scratch_shapes=[
                    pltpu.VMEM((H, S, dh), jnp.bfloat16),   # K, head-major, carried
                    pltpu.VMEM((H, S, dh), jnp.bfloat16),   # V, head-major, carried
                ],
            ),
            compiler_params=pltpu.CompilerParams(
                # b parallel (megacore-shardable); qi 'arbitrary' because the
                # K/V scratch carries across query tiles.
                dimension_semantics=("parallel", "arbitrary"),
                vmem_limit_bytes=vmem_bytes,
            ),
            cost_estimate=cost,
        )(
            x,
            kparams["wq"], kparams["bq"],
            kparams["wkv"], kparams["bkv"],
            kparams["wo"], kparams["bo"],
            kparams["g_attn"], kparams["b_attn"],
            kparams["w1"], kparams["b1"],
            kparams["w2"], kparams["b2"],
            kparams["g_ffn"], kparams["b_ffn"],
        )

    if _HAS_BUFFERED:
        try:
            return run(True)
        except Exception:
            # pipeline_mode=pl.Buffered(1) unsupported in this jax version:
            # fall back to default double-buffered weight blocks.
            pass
    return run(False)


def init_params(key, embed_dim, dim_ffn):
    keys = jax.random.split(key, 6)
    D, F_dim = embed_dim, dim_ffn
    s = 0.02
    return {
        "wq": s * jax.random.normal(keys[0], (D, D), jnp.float32),
        "bq": jnp.zeros((1, D), jnp.float32),
        "wk": s * jax.random.normal(keys[1], (D, D), jnp.float32),
        "bk": jnp.zeros((1, D), jnp.float32),
        "wv": s * jax.random.normal(keys[2], (D, D), jnp.float32),
        "bv": jnp.zeros((1, D), jnp.float32),
        "wo": s * jax.random.normal(keys[3], (D, D), jnp.float32),
        "bo": jnp.zeros((1, D), jnp.float32),
        "g_attn": jnp.ones((1, D), jnp.float32),
        "b_attn": jnp.zeros((1, D), jnp.float32),
        "w1": s * jax.random.normal(keys[4], (D, F_dim), jnp.float32),
        "b1": jnp.zeros((1, F_dim), jnp.float32),
        "w2": s * jax.random.normal(keys[5], (F_dim, D), jnp.float32),
        "b2": jnp.zeros((1, D), jnp.float32),
        "g_ffn": jnp.ones((1, D), jnp.float32),
        "b_ffn": jnp.zeros((1, D), jnp.float32),
    }


if __name__ == "__main__":
    # Demo shapes (small). Note: D=32 runs at 25% lane utilization; production
    # shapes should use D, dim_ffn as multiples of 256 for full MXU width.
    B, S, D = 2, 8, 32          # batch, seq, embed_dim
    num_head = 4
    dim_ffn = 64                # small stand-in for 2048

    key = jax.random.PRNGKey(0)
    k_x, k_p = jax.random.split(key)
    x = jax.random.normal(k_x, (B, S, D), jnp.float32)
    params = init_params(k_p, D, dim_ffn)
    kparams = prepare_params(params, num_head)   # one-time prep (bf16 / fused / folded)

    out = encoder_forward(x, kparams, num_head)
    out = jax.block_until_ready(out)
    assert out.shape == (B, S, D)
    assert bool(jnp.all(jnp.isfinite(out)))
    print("KERNEL_OK")
</pallas_src>

<mosaic_0001>
module attributes {stable_mosaic.version = 11 : i64} {
  func.func @encoder_kernel(%arg0: i32, %arg1: i32, %arg2: memref<1x8x32xf32, #tpu.memory_space<vmem>>, %arg3: memref<32x32xbf16, #tpu.memory_space<vmem>>, %arg4: memref<1x32xf32, #tpu.memory_space<vmem>>, %arg5: memref<32x64xbf16, #tpu.memory_space<vmem>>, %arg6: memref<1x64xf32, #tpu.memory_space<vmem>>, %arg7: memref<32x32xbf16, #tpu.memory_space<vmem>>, %arg8: memref<1x32xf32, #tpu.memory_space<vmem>>, %arg9: memref<1x32xf32, #tpu.memory_space<vmem>>, %arg10: memref<1x32xf32, #tpu.memory_space<vmem>>, %arg11: memref<32x64xbf16, #tpu.memory_space<vmem>>, %arg12: memref<1x64xf32, #tpu.memory_space<vmem>>, %arg13: memref<64x32xbf16, #tpu.memory_space<vmem>>, %arg14: memref<1x32xf32, #tpu.memory_space<vmem>>, %arg15: memref<1x32xf32, #tpu.memory_space<vmem>>, %arg16: memref<1x32xf32, #tpu.memory_space<vmem>>, %arg17: memref<1x8x32xf32, #tpu.memory_space<vmem>>, %arg18: memref<4x8x8xbf16, #tpu.memory_space<vmem>>, %arg19: memref<4x8x8xbf16, #tpu.memory_space<vmem>>) attributes {dimension_semantics = [#tpu.dimension_semantics<parallel>, #tpu.dimension_semantics<arbitrary>], iteration_bounds = array<i64: 2, 1>, scalar_prefetch = 0 : i64, scratch_operands = 2 : i64, tpu.core_type = #tpu.core_type<tc>, window_params = [{transform_indices = @transform_0, window_bounds = array<i64: 1, 8, 32>}, {pipeline_mode = #tpu.pipeline_mode<synchronous>, transform_indices = @transform_1, window_bounds = array<i64: 32, 32>}, {pipeline_mode = #tpu.pipeline_mode<synchronous>, transform_indices = @transform_2, window_bounds = array<i64: 1, 32>}, {pipeline_mode = #tpu.pipeline_mode<synchronous>, transform_indices = @transform_3, window_bounds = array<i64: 32, 64>}, {pipeline_mode = #tpu.pipeline_mode<synchronous>, transform_indices = @transform_4, window_bounds = array<i64: 1, 64>}, {pipeline_mode = #tpu.pipeline_mode<synchronous>, transform_indices = @transform_5, window_bounds = array<i64: 32, 32>}, {pipeline_mode = #tpu.pipeline_mode<synchronous>, transform_indices = @transform_6, window_bounds = array<i64: 1, 32>}, {pipeline_mode = #tpu.pipeline_mode<synchronous>, transform_indices = @transform_7, window_bounds = array<i64: 1, 32>}, {pipeline_mode = #tpu.pipeline_mode<synchronous>, transform_indices = @transform_8, window_bounds = array<i64: 1, 32>}, {pipeline_mode = #tpu.pipeline_mode<synchronous>, transform_indices = @transform_9, window_bounds = array<i64: 32, 64>}, {pipeline_mode = #tpu.pipeline_mode<synchronous>, transform_indices = @transform_10, window_bounds = array<i64: 1, 64>}, {pipeline_mode = #tpu.pipeline_mode<synchronous>, transform_indices = @transform_11, window_bounds = array<i64: 64, 32>}, {pipeline_mode = #tpu.pipeline_mode<synchronous>, transform_indices = @transform_12, window_bounds = array<i64: 1, 32>}, {pipeline_mode = #tpu.pipeline_mode<synchronous>, transform_indices = @transform_13, window_bounds = array<i64: 1, 32>}, {pipeline_mode = #tpu.pipeline_mode<synchronous>, transform_indices = @transform_14, window_bounds = array<i64: 1, 32>}, {transform_indices = @transform_15, window_bounds = array<i64: 1, 8, 32>}]} {
    %c0_i32 = arith.constant 0 : i32
    %0 = arith.cmpi eq, %arg1, %c0_i32 : i32
    %1 = arith.extui %0 : i1 to i32
    %c0_i32_0 = arith.constant 0 : i32
    %2 = arith.cmpi ne, %1, %c0_i32_0 : i32
    scf.if %2 {
      %c0_55 = arith.constant 0 : index
      %c0_56 = arith.constant 0 : index
      %c0_57 = arith.constant 0 : index
      %106 = vector.load %arg2[%c0_55, %c0_56, %c0_57] : memref<1x8x32xf32, #tpu.memory_space<vmem>>, vector<1x8x32xf32>
      %107 = vector.shape_cast %106 : vector<1x8x32xf32> to vector<8x32xf32>
      %108 = arith.truncf %107 : vector<8x32xf32> to vector<8x32xbf16>
      %c0_58 = arith.constant 0 : index
      %c0_59 = arith.constant 0 : index
      %109 = vector.load %arg5[%c0_58, %c0_59] : memref<32x64xbf16, #tpu.memory_space<vmem>>, vector<32x64xbf16>
      %cst_60 = arith.constant dense<0.000000e+00> : vector<8x64xf32>
      %110 = tpu.matmul %108, %109, %cst_60 {dimension_numbers = #tpu.dot_dimension_numbers<[1], [0], [0], [1], [0, 0, 1, 1], [], []>} : vector<8x32xbf16>, vector<32x64xbf16>, vector<8x64xf32> -> vector<8x64xf32>
      %c0_61 = arith.constant 0 : index
      %c0_62 = arith.constant 0 : index
      %111 = vector.load %arg6[%c0_61, %c0_62] : memref<1x64xf32, #tpu.memory_space<vmem>>, vector<1x64xf32>
      %112 = vector.broadcast %111 : vector<1x64xf32> to vector<8x64xf32>
      %113 = arith.addf %110, %112 : vector<8x64xf32>
      %114 = vector.extract_strided_slice %113 {offsets = [0, 0], sizes = [8, 32], strides = [1, 1]} : vector<8x64xf32> to vector<8x32xf32>
      %115 = vector.extract_strided_slice %113 {offsets = [0, 32], sizes = [8, 32], strides = [1, 1]} : vector<8x64xf32> to vector<8x32xf32>
      %116 = vector.shape_cast %114 : vector<8x32xf32> to vector<8x4x8xf32>
      %117 = tpu.transpose %116, [1, 0, 2] : vector<8x4x8xf32> -> vector<4x8x8xf32>
      %118 = arith.truncf %117 : vector<4x8x8xf32> to vector<4x8x8xbf16>
      %c0_63 = arith.constant 0 : index
      %c0_64 = arith.constant 0 : index
      %c0_65 = arith.constant 0 : index
      %119 = vector.load %arg18[%c0_63, %c0_64, %c0_65] : memref<4x8x8xbf16, #tpu.memory_space<vmem>>, vector<4x8x8xbf16>
      tpu.vector_store %arg18[%c0_63, %c0_64, %c0_65], %118 {strides = array<i32>} : memref<4x8x8xbf16, #tpu.memory_space<vmem>>, vector<4x8x8xbf16>,
      %120 = vector.shape_cast %115 : vector<8x32xf32> to vector<8x4x8xf32>
      %121 = tpu.transpose %120, [1, 0, 2] : vector<8x4x8xf32> -> vector<4x8x8xf32>
      %122 = arith.truncf %121 : vector<4x8x8xf32> to vector<4x8x8xbf16>
      %c0_66 = arith.constant 0 : index
      %c0_67 = arith.constant 0 : index
      %c0_68 = arith.constant 0 : index
      %123 = vector.load %arg19[%c0_66, %c0_67, %c0_68] : memref<4x8x8xbf16, #tpu.memory_space<vmem>>, vector<4x8x8xbf16>
      tpu.vector_store %arg19[%c0_66, %c0_67, %c0_68], %122 {strides = array<i32>} : memref<4x8x8xbf16, #tpu.memory_space<vmem>>, vector<4x8x8xbf16>,
    } else {
    }
    %c0 = arith.constant 0 : index
    %c0_1 = arith.constant 0 : index
    %c0_2 = arith.constant 0 : index
    %3 = vector.load %arg2[%c0, %c0_1, %c0_2] : memref<1x8x32xf32, #tpu.memory_space<vmem>>, vector<1x8x32xf32>
    %4 = vector.shape_cast %3 : vector<1x8x32xf32> to vector<8x32xf32>
    %5 = arith.truncf %4 : vector<8x32xf32> to vector<8x32xbf16>
    %c0_3 = arith.constant 0 : index
    %c0_4 = arith.constant 0 : index
    %6 = vector.load %arg3[%c0_3, %c0_4] : memref<32x32xbf16, #tpu.memory_space<vmem>>, vector<32x32xbf16>
    %cst = arith.constant dense<0.000000e+00> : vector<8x32xf32>
    %7 = tpu.matmul %5, %6, %cst {dimension_numbers = #tpu.dot_dimension_numbers<[1], [0], [0], [1], [0, 0, 1, 1], [], []>} : vector<8x32xbf16>, vector<32x32xbf16>, vector<8x32xf32> -> vector<8x32xf32>
    %c0_5 = arith.constant 0 : index
    %c0_6 = arith.constant 0 : index
    %8 = vector.load %arg4[%c0_5, %c0_6] : memref<1x32xf32, #tpu.memory_space<vmem>>, vector<1x32xf32>
    %9 = vector.broadcast %8 : vector<1x32xf32> to vector<8x32xf32>
    %10 = arith.addf %7, %9 : vector<8x32xf32>
    %11 = vector.shape_cast %10 : vector<8x32xf32> to vector<8x4x8xf32>
    %12 = tpu.transpose %11, [1, 0, 2] : vector<8x4x8xf32> -> vector<4x8x8xf32>
    %13 = arith.truncf %12 : vector<4x8x8xf32> to vector<4x8x8xbf16>
    %c0_7 = arith.constant 0 : index
    %c0_8 = arith.constant 0 : index
    %c0_9 = arith.constant 0 : index
    %14 = vector.load %arg18[%c0_7, %c0_8, %c0_9] : memref<4x8x8xbf16, #tpu.memory_space<vmem>>, vector<4x8x8xbf16>
    "tpu.trace_start"() <{level = 10 : i32, message = "hqd,hkd->hqk"}> : () -> ()
    %cst_10 = arith.constant dense<0.000000e+00> : vector<4x8x8xf32>
    %15 = tpu.matmul %13, %14, %cst_10 {dimension_numbers = #tpu.dot_dimension_numbers<[2], [2], [1], [1], [0, 0, 0, 1, 1, 1], [0], [0]>} : vector<4x8x8xbf16>, vector<4x8x8xbf16>, vector<4x8x8xf32> -> vector<4x8x8xf32>
    "tpu.trace_stop"() : () -> ()
    %cst_11 = arith.constant dense<0xFF800000> : vector<4x8xf32>
    %16 = vector.multi_reduction <maximumf>, %15, %cst_11 [2] : vector<4x8x8xf32> to vector<4x8xf32>
    %17 = vector.shape_cast %16 : vector<4x8xf32> to vector<4x8x1xf32>
    %18 = vector.broadcast %17 : vector<4x8x1xf32> to vector<4x8x8xf32>
    %19 = arith.subf %15, %18 : vector<4x8x8xf32>
    %20 = math.exp %19 : vector<4x8x8xf32>
    %cst_12 = arith.constant dense<0.000000e+00> : vector<4x8xf32>
    %21 = vector.multi_reduction <add>, %20, %cst_12 [2] : vector<4x8x8xf32> to vector<4x8xf32>
    %22 = vector.shape_cast %21 : vector<4x8xf32> to vector<4x8x1xf32>
    %23 = tpu.reciprocal %22 {approx = true} : vector<4x8x1xf32> -> vector<4x8x1xf32>
    %24 = vector.broadcast %23 : vector<4x8x1xf32> to vector<4x8x8xf32>
    %25 = arith.mulf %20, %24 : vector<4x8x8xf32>
    %26 = arith.truncf %25 : vector<4x8x8xf32> to vector<4x8x8xbf16>
    %c0_13 = arith.constant 0 : index
    %c0_14 = arith.constant 0 : index
    %c0_15 = arith.constant 0 : index
    %27 = vector.load %arg19[%c0_13, %c0_14, %c0_15] : memref<4x8x8xbf16, #tpu.memory_space<vmem>>, vector<4x8x8xbf16>
    "tpu.trace_start"() <{level = 10 : i32, message = "hqk,hkd->hqd"}> : () -> ()
    %cst_16 = arith.constant dense<0.000000e+00> : vector<4x8x8xf32>
    %28 = tpu.matmul %26, %27, %cst_16 {dimension_numbers = #tpu.dot_dimension_numbers<[2], [1], [1], [2], [0, 0, 0, 1, 1, 2], [0], [0]>} : vector<4x8x8xbf16>, vector<4x8x8xbf16>, vector<4x8x8xf32> -> vector<4x8x8xf32>
    "tpu.trace_stop"() : () -> ()
    %29 = tpu.transpose %28, [1, 0, 2] : vector<4x8x8xf32> -> vector<8x4x8xf32>
    %30 = vector.shape_cast %29 : vector<8x4x8xf32> to vector<8x32xf32>
    %31 = arith.truncf %30 : vector<8x32xf32> to vector<8x32xbf16>
    %c0_17 = arith.constant 0 : index
    %c0_18 = arith.constant 0 : index
    %32 = vector.load %arg7[%c0_17, %c0_18] : memref<32x32xbf16, #tpu.memory_space<vmem>>, vector<32x32xbf16>
    %cst_19 = arith.constant dense<0.000000e+00> : vector<8x32xf32>
    %33 = tpu.matmul %31, %32, %cst_19 {dimension_numbers = #tpu.dot_dimension_numbers<[1], [0], [0], [1], [0, 0, 1, 1], [], []>} : vector<8x32xbf16>, vector<32x32xbf16>, vector<8x32xf32> -> vector<8x32xf32>
    %c0_20 = arith.constant 0 : index
    %c0_21 = arith.constant 0 : index
    %34 = vector.load %arg8[%c0_20, %c0_21] : memref<1x32xf32, #tpu.memory_space<vmem>>, vector<1x32xf32>
    %35 = vector.broadcast %34 : vector<1x32xf32> to vector<8x32xf32>
    %36 = arith.addf %33, %35 : vector<8x32xf32>
    %37 = arith.addf %4, %36 : vector<8x32xf32>
    %c0_22 = arith.constant 0 : index
    %c0_23 = arith.constant 0 : index
    %38 = vector.load %arg9[%c0_22, %c0_23] : memref<1x32xf32, #tpu.memory_space<vmem>>, vector<1x32xf32>
    %c0_24 = arith.constant 0 : index
    %c0_25 = arith.constant 0 : index
    %39 = vector.load %arg10[%c0_24, %c0_25] : memref<1x32xf32, #tpu.memory_space<vmem>>, vector<1x32xf32>
    %cst_26 = arith.constant dense<0.000000e+00> : vector<8xf32>
    %40 = vector.multi_reduction <add>, %37, %cst_26 [1] : vector<8x32xf32> to vector<8xf32>
    %41 = vector.shape_cast %40 : vector<8xf32> to vector<8x1xf32>
    %cst_27 = arith.constant 3.200000e+01 : f32
    %42 = vector.broadcast %cst_27 : f32 to vector<8x1xf32>
    %43 = arith.divf %41, %42 : vector<8x1xf32>
    %44 = vector.broadcast %43 : vector<8x1xf32> to vector<8x32xf32>
    %45 = arith.subf %37, %44 : vector<8x32xf32>
    %46 = arith.mulf %45, %45 : vector<8x32xf32>
    %cst_28 = arith.constant dense<0.000000e+00> : vector<8xf32>
    %47 = vector.multi_reduction <add>, %46, %cst_28 [1] : vector<8x32xf32> to vector<8xf32>
    %48 = vector.shape_cast %47 : vector<8xf32> to vector<8x1xf32>
    %cst_29 = arith.constant 3.200000e+01 : f32
    %49 = vector.broadcast %cst_29 : f32 to vector<8x1xf32>
    %50 = arith.divf %48, %49 : vector<8x1xf32>
    %cst_30 = arith.constant 9.99999974E-6 : f32
    %51 = vector.broadcast %cst_30 : f32 to vector<8x1xf32>
    %52 = arith.addf %50, %51 : vector<8x1xf32>
    %53 = math.rsqrt %52 : vector<8x1xf32>
    %54 = vector.broadcast %43 : vector<8x1xf32> to vector<8x32xf32>
    %55 = arith.subf %37, %54 : vector<8x32xf32>
    %56 = vector.broadcast %53 : vector<8x1xf32> to vector<8x32xf32>
    %57 = arith.mulf %55, %56 : vector<8x32xf32>
    %58 = vector.broadcast %38 : vector<1x32xf32> to vector<8x32xf32>
    %59 = arith.mulf %57, %58 : vector<8x32xf32>
    %60 = vector.broadcast %39 : vector<1x32xf32> to vector<8x32xf32>
    %61 = arith.addf %59, %60 : vector<8x32xf32>
    %62 = arith.truncf %61 : vector<8x32xf32> to vector<8x32xbf16>
    %c0_31 = arith.constant 0 : index
    %c0_32 = arith.constant 0 : index
    %63 = vector.load %arg11[%c0_31, %c0_32] : memref<32x64xbf16, #tpu.memory_space<vmem>>, vector<32x64xbf16>
    %cst_33 = arith.constant dense<0.000000e+00> : vector<8x64xf32>
    %64 = tpu.matmul %62, %63, %cst_33 {dimension_numbers = #tpu.dot_dimension_numbers<[1], [0], [0], [1], [0, 0, 1, 1], [], []>} : vector<8x32xbf16>, vector<32x64xbf16>, vector<8x64xf32> -> vector<8x64xf32>
    %c0_34 = arith.constant 0 : index
    %c0_35 = arith.constant 0 : index
    %65 = vector.load %arg12[%c0_34, %c0_35] : memref<1x64xf32, #tpu.memory_space<vmem>>, vector<1x64xf32>
    %66 = vector.broadcast %65 : vector<1x64xf32> to vector<8x64xf32>
    %67 = arith.addf %64, %66 : vector<8x64xf32>
    %cst_36 = arith.constant 0.000000e+00 : f32
    %68 = vector.broadcast %cst_36 : f32 to vector<8x64xf32>
    %69 = arith.maximumf %67, %68 : vector<8x64xf32>
    %70 = arith.truncf %69 : vector<8x64xf32> to vector<8x64xbf16>
    %c0_37 = arith.constant 0 : index
    %c0_38 = arith.constant 0 : index
    %71 = vector.load %arg13[%c0_37, %c0_38] : memref<64x32xbf16, #tpu.memory_space<vmem>>, vector<64x32xbf16>
    %cst_39 = arith.constant dense<0.000000e+00> : vector<8x32xf32>
    %72 = tpu.matmul %70, %71, %cst_39 {dimension_numbers = #tpu.dot_dimension_numbers<[1], [0], [0], [1], [0, 0, 1, 1], [], []>} : vector<8x64xbf16>, vector<64x32xbf16>, vector<8x32xf32> -> vector<8x32xf32>
    %c0_40 = arith.constant 0 : index
    %c0_41 = arith.constant 0 : index
    %73 = vector.load %arg14[%c0_40, %c0_41] : memref<1x32xf32, #tpu.memory_space<vmem>>, vector<1x32xf32>
    %74 = vector.broadcast %73 : vector<1x32xf32> to vector<8x32xf32>
    %75 = arith.addf %72, %74 : vector<8x32xf32>
    %cst_42 = arith.constant 0.000000e+00 : f32
    %76 = vector.broadcast %cst_42 : f32 to vector<8x32xf32>
    %77 = arith.maximumf %75, %76 : vector<8x32xf32>
    %78 = arith.addf %61, %77 : vector<8x32xf32>
    %c0_43 = arith.constant 0 : index
    %c0_44 = arith.constant 0 : index
    %79 = vector.load %arg15[%c0_43, %c0_44] : memref<1x32xf32, #tpu.memory_space<vmem>>, vector<1x32xf32>
    %c0_45 = arith.constant 0 : index
    %c0_46 = arith.constant 0 : index
    %80 = vector.load %arg16[%c0_45, %c0_46] : memref<1x32xf32, #tpu.memory_space<vmem>>, vector<1x32xf32>
    %cst_47 = arith.constant dense<0.000000e+00> : vector<8xf32>
    %81 = vector.multi_reduction <add>, %78, %cst_47 [1] : vector<8x32xf32> to vector<8xf32>
    %82 = vector.shape_cast %81 : vector<8xf32> to vector<8x1xf32>
    %cst_48 = arith.constant 3.200000e+01 : f32
    %83 = vector.broadcast %cst_48 : f32 to vector<8x1xf32>
    %84 = arith.divf %82, %83 : vector<8x1xf32>
    %85 = vector.broadcast %84 : vector<8x1xf32> to vector<8x32xf32>
    %86 = arith.subf %78, %85 : vector<8x32xf32>
    %87 = arith.mulf %86, %86 : vector<8x32xf32>
    %cst_49 = arith.constant dense<0.000000e+00> : vector<8xf32>
    %88 = vector.multi_reduction <add>, %87, %cst_49 [1] : vector<8x32xf32> to vector<8xf32>
    %89 = vector.shape_cast %88 : vector<8xf32> to vector<8x1xf32>
    %cst_50 = arith.constant 3.200000e+01 : f32
    %90 = vector.broadcast %cst_50 : f32 to vector<8x1xf32>
    %91 = arith.divf %89, %90 : vector<8x1xf32>
    %cst_51 = arith.constant 9.99999974E-6 : f32
    %92 = vector.broadcast %cst_51 : f32 to vector<8x1xf32>
    %93 = arith.addf %91, %92 : vector<8x1xf32>
    %94 = math.rsqrt %93 : vector<8x1xf32>
    %95 = vector.broadcast %84 : vector<8x1xf32> to vector<8x32xf32>
    %96 = arith.subf %78, %95 : vector<8x32xf32>
    %97 = vector.broadcast %94 : vector<8x1xf32> to vector<8x32xf32>
    %98 = arith.mulf %96, %97 : vector<8x32xf32>
    %99 = vector.broadcast %79 : vector<1x32xf32> to vector<8x32xf32>
    %100 = arith.mulf %98, %99 : vector<8x32xf32>
    %101 = vector.broadcast %80 : vector<1x32xf32> to vector<8x32xf32>
    %102 = arith.addf %100, %101 : vector<8x32xf32>
    %c0_52 = arith.constant 0 : index
    %c0_53 = arith.constant 0 : index
    %c0_54 = arith.constant 0 : index
    %103 = vector.load %arg17[%c0_52, %c0_53, %c0_54] : memref<1x8x32xf32, #tpu.memory_space<vmem>>, vector<1x8x32xf32>
    %104 = vector.shape_cast %103 : vector<1x8x32xf32> to vector<8x32xf32>
    %105 = vector.shape_cast %102 : vector<8x32xf32> to vector<1x8x32xf32>
    tpu.vector_store %arg17[%c0_52, %c0_53, %c0_54], %105 {strides = array<i32>} : memref<1x8x32xf32, #tpu.memory_space<vmem>>, vector<1x8x32xf32>,
    return
  }
  func.func @transform_0(%arg0: i32, %arg1: i32) -> (i32, i32, i32) {
    %c0_i32 = arith.constant 0 : i32
    %c0_i32_0 = arith.constant 0 : i32
    %c0_i32_1 = arith.constant 0 : i32
    return %arg0, %c0_i32, %c0_i32_0 : i32, i32, i32
  }
  func.func @transform_1(%arg0: i32, %arg1: i32) -> (i32, i32) {
    %c0_i32 = arith.constant 0 : i32
    %c0_i32_0 = arith.constant 0 : i32
    %c0_i32_1 = arith.constant 0 : i32
    return %c0_i32, %c0_i32_0 : i32, i32
  }
  func.func @transform_2(%arg0: i32, %arg1: i32) -> (i32, i32) {
    %c0_i32 = arith.constant 0 : i32
    %c0_i32_0 = arith.constant 0 : i32
    %c0_i32_1 = arith.constant 0 : i32
    return %c0_i32, %c0_i32_0 : i32, i32
  }
  func.func @transform_3(%arg0: i32, %arg1: i32) -> (i32, i32) {
    %c0_i32 = arith.constant 0 : i32
    %c0_i32_0 = arith.constant 0 : i32
    %c0_i32_1 = arith.constant 0 : i32
    return %c0_i32, %c0_i32_0 : i32, i32
  }
  func.func @transform_4(%arg0: i32, %arg1: i32) -> (i32, i32) {
    %c0_i32 = arith.constant 0 : i32
    %c0_i32_0 = arith.constant 0 : i32
    %c0_i32_1 = arith.constant 0 : i32
    return %c0_i32, %c0_i32_0 : i32, i32
  }
  func.func @transform_5(%arg0: i32, %arg1: i32) -> (i32, i32) {
    %c0_i32 = arith.constant 0 : i32
    %c0_i32_0 = arith.constant 0 : i32
    %c0_i32_1 = arith.constant 0 : i32
    return %c0_i32, %c0_i32_0 : i32, i32
  }
  func.func @transform_6(%arg0: i32, %arg1: i32) -> (i32, i32) {
    %c0_i32 = arith.constant 0 : i32
    %c0_i32_0 = arith.constant 0 : i32
    %c0_i32_1 = arith.constant 0 : i32
    return %c0_i32, %c0_i32_0 : i32, i32
  }
  func.func @transform_7(%arg0: i32, %arg1: i32) -> (i32, i32) {
    %c0_i32 = arith.constant 0 : i32
    %c0_i32_0 = arith.constant 0 : i32
    %c0_i32_1 = arith.constant 0 : i32
    return %c0_i32, %c0_i32_0 : i32, i32
  }
  func.func @transform_8(%arg0: i32, %arg1: i32) -> (i32, i32) {
    %c0_i32 = arith.constant 0 : i32
    %c0_i32_0 = arith.constant 0 : i32
    %c0_i32_1 = arith.constant 0 : i32
    return %c0_i32, %c0_i32_0 : i32, i32
  }
  func.func @transform_9(%arg0: i32, %arg1: i32) -> (i32, i32) {
    %c0_i32 = arith.constant 0 : i32
    %c0_i32_0 = arith.constant 0 : i32
    %c0_i32_1 = arith.constant 0 : i32
    return %c0_i32, %c0_i32_0 : i32, i32
  }
  func.func @transform_10(%arg0: i32, %arg1: i32) -> (i32, i32) {
    %c0_i32 = arith.constant 0 : i32
    %c0_i32_0 = arith.constant 0 : i32
    %c0_i32_1 = arith.constant 0 : i32
    return %c0_i32, %c0_i32_0 : i32, i32
  }
  func.func @transform_11(%arg0: i32, %arg1: i32) -> (i32, i32) {
    %c0_i32 = arith.constant 0 : i32
    %c0_i32_0 = arith.constant 0 : i32
    %c0_i32_1 = arith.constant 0 : i32
    return %c0_i32, %c0_i32_0 : i32, i32
  }
  func.func @transform_12(%arg0: i32, %arg1: i32) -> (i32, i32) {
    %c0_i32 = arith.constant 0 : i32
    %c0_i32_0 = arith.constant 0 : i32
    %c0_i32_1 = arith.constant 0 : i32
    return %c0_i32, %c0_i32_0 : i32, i32
  }
  func.func @transform_13(%arg0: i32, %arg1: i32) -> (i32, i32) {
    %c0_i32 = arith.constant 0 : i32
    %c0_i32_0 = arith.constant 0 : i32
    %c0_i32_1 = arith.constant 0 : i32
    return %c0_i32, %c0_i32_0 : i32, i32
  }
  func.func @transform_14(%arg0: i32, %arg1: i32) -> (i32, i32) {
    %c0_i32 = arith.constant 0 : i32
    %c0_i32_0 = arith.constant 0 : i32
    %c0_i32_1 = arith.constant 0 : i32
    return %c0_i32, %c0_i32_0 : i32, i32
  }
  func.func @transform_15(%arg0: i32, %arg1: i32) -> (i32, i32, i32) {
    %c0_i32 = arith.constant 0 : i32
    %c0_i32_0 = arith.constant 0 : i32
    return %arg0, %arg1, %c0_i32 : i32, i32, i32
  }
}

module attributes {stable_mosaic.version = 11 : i64} {
  func.func @encoder_kernel(%arg0: i32, %arg1: i32, %arg2: memref<1x8x32xf32, #tpu.memory_space<vmem>>, %arg3: memref<32x32xbf16, #tpu.memory_space<vmem>>, %arg4: memref<1x32xf32, #tpu.memory_space<vmem>>, %arg5: memref<32x64xbf16, #tpu.memory_space<vmem>>, %arg6: memref<1x64xf32, #tpu.memory_space<vmem>>, %arg7: memref<32x32xbf16, #tpu.memory_space<vmem>>, %arg8: memref<1x32xf32, #tpu.memory_space<vmem>>, %arg9: memref<1x32xf32, #tpu.memory_space<vmem>>, %arg10: memref<1x32xf32, #tpu.memory_space<vmem>>, %arg11: memref<32x64xbf16, #tpu.memory_space<vmem>>, %arg12: memref<1x64xf32, #tpu.memory_space<vmem>>, %arg13: memref<64x32xbf16, #tpu.memory_space<vmem>>, %arg14: memref<1x32xf32, #tpu.memory_space<vmem>>, %arg15: memref<1x32xf32, #tpu.memory_space<vmem>>, %arg16: memref<1x32xf32, #tpu.memory_space<vmem>>, %arg17: memref<1x8x32xf32, #tpu.memory_space<vmem>>, %arg18: memref<4x8x8xbf16, #tpu.memory_space<vmem>>, %arg19: memref<4x8x8xbf16, #tpu.memory_space<vmem>>) attributes {dimension_semantics = [#tpu.dimension_semantics<parallel>, #tpu.dimension_semantics<arbitrary>], iteration_bounds = array<i64: 2, 1>, scalar_prefetch = 0 : i64, scratch_operands = 2 : i64, tpu.core_type = #tpu.core_type<tc>, window_params = [{transform_indices = @transform_0, window_bounds = array<i64: 1, 8, 32>}, {pipeline_mode = #tpu.pipeline_mode<synchronous>, transform_indices = @transform_1, window_bounds = array<i64: 32, 32>}, {pipeline_mode = #tpu.pipeline_mode<synchronous>, transform_indices = @transform_2, window_bounds = array<i64: 1, 32>}, {pipeline_mode = #tpu.pipeline_mode<synchronous>, transform_indices = @transform_3, window_bounds = array<i64: 32, 64>}, {pipeline_mode = #tpu.pipeline_mode<synchronous>, transform_indices = @transform_4, window_bounds = array<i64: 1, 64>}, {pipeline_mode = #tpu.pipeline_mode<synchronous>, transform_indices = @transform_5, window_bounds = array<i64: 32, 32>}, {pipeline_mode = #tpu.pipeline_mode<synchronous>, transform_indices = @transform_6, window_bounds = array<i64: 1, 32>}, {pipeline_mode = #tpu.pipeline_mode<synchronous>, transform_indices = @transform_7, window_bounds = array<i64: 1, 32>}, {pipeline_mode = #tpu.pipeline_mode<synchronous>, transform_indices = @transform_8, window_bounds = array<i64: 1, 32>}, {pipeline_mode = #tpu.pipeline_mode<synchronous>, transform_indices = @transform_9, window_bounds = array<i64: 32, 64>}, {pipeline_mode = #tpu.pipeline_mode<synchronous>, transform_indices = @transform_10, window_bounds = array<i64: 1, 64>}, {pipeline_mode = #tpu.pipeline_mode<synchronous>, transform_indices = @transform_11, window_bounds = array<i64: 64, 32>}, {pipeline_mode = #tpu.pipeline_mode<synchronous>, transform_indices = @transform_12, window_bounds = array<i64: 1, 32>}, {pipeline_mode = #tpu.pipeline_mode<synchronous>, transform_indices = @transform_13, window_bounds = array<i64: 1, 32>}, {pipeline_mode = #tpu.pipeline_mode<synchronous>, transform_indices = @transform_14, window_bounds = array<i64: 1, 32>}, {transform_indices = @transform_15, window_bounds = array<i64: 1, 8, 32>}]} {
    %c0_i32 = arith.constant 0 : i32
    %0 = arith.cmpi eq, %arg1, %c0_i32 : i32
    %1 = arith.extui %0 : i1 to i32
    %c0_i32_0 = arith.constant 0 : i32
    %2 = arith.cmpi ne, %1, %c0_i32_0 : i32
    scf.if %2 {
      %c0_55 = arith.constant 0 : index
      %c0_56 = arith.constant 0 : index
      %c0_57 = arith.constant 0 : index
      %106 = vector.load %arg2[%c0_55, %c0_56, %c0_57] : memref<1x8x32xf32, #tpu.memory_space<vmem>>, vector<1x8x32xf32>
      %107 = vector.shape_cast %106 : vector<1x8x32xf32> to vector<8x32xf32>
      %108 = arith.truncf %107 : vector<8x32xf32> to vector<8x32xbf16>
      %c0_58 = arith.constant 0 : index
      %c0_59 = arith.constant 0 : index
      %109 = vector.load %arg5[%c0_58, %c0_59] : memref<32x64xbf16, #tpu.memory_space<vmem>>, vector<32x64xbf16>
      %cst_60 = arith.constant dense<0.000000e+00> : vector<8x64xf32>
      %110 = tpu.matmul %108, %109, %cst_60 {dimension_numbers = #tpu.dot_dimension_numbers<[1], [0], [0], [1], [0, 0, 1, 1], [], []>} : vector<8x32xbf16>, vector<32x64xbf16>, vector<8x64xf32> -> vector<8x64xf32>
      %c0_61 = arith.constant 0 : index
      %c0_62 = arith.constant 0 : index
      %111 = vector.load %arg6[%c0_61, %c0_62] : memref<1x64xf32, #tpu.memory_space<vmem>>, vector<1x64xf32>
      %112 = vector.broadcast %111 : vector<1x64xf32> to vector<8x64xf32>
      %113 = arith.addf %110, %112 : vector<8x64xf32>
      %114 = vector.extract_strided_slice %113 {offsets = [0, 0], sizes = [8, 32], strides = [1, 1]} : vector<8x64xf32> to vector<8x32xf32>
      %115 = vector.extract_strided_slice %113 {offsets = [0, 32], sizes = [8, 32], strides = [1, 1]} : vector<8x64xf32> to vector<8x32xf32>
      %116 = vector.shape_cast %114 : vector<8x32xf32> to vector<8x4x8xf32>
      %117 = tpu.transpose %116, [1, 0, 2] : vector<8x4x8xf32> -> vector<4x8x8xf32>
      %118 = arith.truncf %117 : vector<4x8x8xf32> to vector<4x8x8xbf16>
      %c0_63 = arith.constant 0 : index
      %c0_64 = arith.constant 0 : index
      %c0_65 = arith.constant 0 : index
      %119 = vector.load %arg18[%c0_63, %c0_64, %c0_65] : memref<4x8x8xbf16, #tpu.memory_space<vmem>>, vector<4x8x8xbf16>
      tpu.vector_store %arg18[%c0_63, %c0_64, %c0_65], %118 {strides = array<i32>} : memref<4x8x8xbf16, #tpu.memory_space<vmem>>, vector<4x8x8xbf16>,
      %120 = vector.shape_cast %115 : vector<8x32xf32> to vector<8x4x8xf32>
      %121 = tpu.transpose %120, [1, 0, 2] : vector<8x4x8xf32> -> vector<4x8x8xf32>
      %122 = arith.truncf %121 : vector<4x8x8xf32> to vector<4x8x8xbf16>
      %c0_66 = arith.constant 0 : index
      %c0_67 = arith.constant 0 : index
      %c0_68 = arith.constant 0 : index
      %123 = vector.load %arg19[%c0_66, %c0_67, %c0_68] : memref<4x8x8xbf16, #tpu.memory_space<vmem>>, vector<4x8x8xbf16>
      tpu.vector_store %arg19[%c0_66, %c0_67, %c0_68], %122 {strides = array<i32>} : memref<4x8x8xbf16, #tpu.memory_space<vmem>>, vector<4x8x8xbf16>,
    } else {
    }
    %c0 = arith.constant 0 : index
    %c0_1 = arith.constant 0 : index
    %c0_2 = arith.constant 0 : index
    %3 = vector.load %arg2[%c0, %c0_1, %c0_2] : memref<1x8x32xf32, #tpu.memory_space<vmem>>, vector<1x8x32xf32>
    %4 = vector.shape_cast %3 : vector<1x8x32xf32> to vector<8x32xf32>
    %5 = arith.truncf %4 : vector<8x32xf32> to vector<8x32xbf16>
    %c0_3 = arith.constant 0 : index
    %c0_4 = arith.constant 0 : index
    %6 = vector.load %arg3[%c0_3, %c0_4] : memref<32x32xbf16, #tpu.memory_space<vmem>>, vector<32x32xbf16>
    %cst = arith.constant dense<0.000000e+00> : vector<8x32xf32>
    %7 = tpu.matmul %5, %6, %cst {dimension_numbers = #tpu.dot_dimension_numbers<[1], [0], [0], [1], [0, 0, 1, 1], [], []>} : vector<8x32xbf16>, vector<32x32xbf16>, vector<8x32xf32> -> vector<8x32xf32>
    %c0_5 = arith.constant 0 : index
    %c0_6 = arith.constant 0 : index
    %8 = vector.load %arg4[%c0_5, %c0_6] : memref<1x32xf32, #tpu.memory_space<vmem>>, vector<1x32xf32>
    %9 = vector.broadcast %8 : vector<1x32xf32> to vector<8x32xf32>
    %10 = arith.addf %7, %9 : vector<8x32xf32>
    %11 = vector.shape_cast %10 : vector<8x32xf32> to vector<8x4x8xf32>
    %12 = tpu.transpose %11, [1, 0, 2] : vector<8x4x8xf32> -> vector<4x8x8xf32>
    %13 = arith.truncf %12 : vector<4x8x8xf32> to vector<4x8x8xbf16>
    %c0_7 = arith.constant 0 : index
    %c0_8 = arith.constant 0 : index
    %c0_9 = arith.constant 0 : index
    %14 = vector.load %arg18[%c0_7, %c0_8, %c0_9] : memref<4x8x8xbf16, #tpu.memory_space<vmem>>, vector<4x8x8xbf16>
    "tpu.trace_start"() <{level = 10 : i32, message = "hqd,hkd->hqk"}> : () -> ()
    %cst_10 = arith.constant dense<0.000000e+00> : vector<4x8x8xf32>
    %15 = tpu.matmul %13, %14, %cst_10 {dimension_numbers = #tpu.dot_dimension_numbers<[2], [2], [1], [1], [0, 0, 0, 1, 1, 1], [0], [0]>} : vector<4x8x8xbf16>, vector<4x8x8xbf16>, vector<4x8x8xf32> -> vector<4x8x8xf32>
    "tpu.trace_stop"() : () -> ()
    %cst_11 = arith.constant dense<0xFF800000> : vector<4x8xf32>
    %16 = vector.multi_reduction <maximumf>, %15, %cst_11 [2] : vector<4x8x8xf32> to vector<4x8xf32>
    %17 = vector.shape_cast %16 : vector<4x8xf32> to vector<4x8x1xf32>
    %18 = vector.broadcast %17 : vector<4x8x1xf32> to vector<4x8x8xf32>
    %19 = arith.subf %15, %18 : vector<4x8x8xf32>
    %20 = math.exp %19 : vector<4x8x8xf32>
    %cst_12 = arith.constant dense<0.000000e+00> : vector<4x8xf32>
    %21 = vector.multi_reduction <add>, %20, %cst_12 [2] : vector<4x8x8xf32> to vector<4x8xf32>
    %22 = vector.shape_cast %21 : vector<4x8xf32> to vector<4x8x1xf32>
    %23 = tpu.reciprocal %22 {approx = true} : vector<4x8x1xf32> -> vector<4x8x1xf32>
    %24 = vector.broadcast %23 : vector<4x8x1xf32> to vector<4x8x8xf32>
    %25 = arith.mulf %20, %24 : vector<4x8x8xf32>
    %26 = arith.truncf %25 : vector<4x8x8xf32> to vector<4x8x8xbf16>
    %c0_13 = arith.constant 0 : index
    %c0_14 = arith.constant 0 : index
    %c0_15 = arith.constant 0 : index
    %27 = vector.load %arg19[%c0_13, %c0_14, %c0_15] : memref<4x8x8xbf16, #tpu.memory_space<vmem>>, vector<4x8x8xbf16>
    "tpu.trace_start"() <{level = 10 : i32, message = "hqk,hkd->hqd"}> : () -> ()
    %cst_16 = arith.constant dense<0.000000e+00> : vector<4x8x8xf32>
    %28 = tpu.matmul %26, %27, %cst_16 {dimension_numbers = #tpu.dot_dimension_numbers<[2], [1], [1], [2], [0, 0, 0, 1, 1, 2], [0], [0]>} : vector<4x8x8xbf16>, vector<4x8x8xbf16>, vector<4x8x8xf32> -> vector<4x8x8xf32>
    "tpu.trace_stop"() : () -> ()
    %29 = tpu.transpose %28, [1, 0, 2] : vector<4x8x8xf32> -> vector<8x4x8xf32>
    %30 = vector.shape_cast %29 : vector<8x4x8xf32> to vector<8x32xf32>
    %31 = arith.truncf %30 : vector<8x32xf32> to vector<8x32xbf16>
    %c0_17 = arith.constant 0 : index
    %c0_18 = arith.constant 0 : index
    %32 = vector.load %arg7[%c0_17, %c0_18] : memref<32x32xbf16, #tpu.memory_space<vmem>>, vector<32x32xbf16>
    %cst_19 = arith.constant dense<0.000000e+00> : vector<8x32xf32>
    %33 = tpu.matmul %31, %32, %cst_19 {dimension_numbers = #tpu.dot_dimension_numbers<[1], [0], [0], [1], [0, 0, 1, 1], [], []>} : vector<8x32xbf16>, vector<32x32xbf16>, vector<8x32xf32> -> vector<8x32xf32>
    %c0_20 = arith.constant 0 : index
    %c0_21 = arith.constant 0 : index
    %34 = vector.load %arg8[%c0_20, %c0_21] : memref<1x32xf32, #tpu.memory_space<vmem>>, vector<1x32xf32>
    %35 = vector.broadcast %34 : vector<1x32xf32> to vector<8x32xf32>
    %36 = arith.addf %33, %35 : vector<8x32xf32>
    %37 = arith.addf %4, %36 : vector<8x32xf32>
    %c0_22 = arith.constant 0 : index
    %c0_23 = arith.constant 0 : index
    %38 = vector.load %arg9[%c0_22, %c0_23] : memref<1x32xf32, #tpu.memory_space<vmem>>, vector<1x32xf32>
    %c0_24 = arith.constant 0 : index
    %c0_25 = arith.constant 0 : index
    %39 = vector.load %arg10[%c0_24, %c0_25] : memref<1x32xf32, #tpu.memory_space<vmem>>, vector<1x32xf32>
    %cst_26 = arith.constant dense<0.000000e+00> : vector<8xf32>
    %40 = vector.multi_reduction <add>, %37, %cst_26 [1] : vector<8x32xf32> to vector<8xf32>
    %41 = vector.shape_cast %40 : vector<8xf32> to vector<8x1xf32>
    %cst_27 = arith.constant 3.200000e+01 : f32
    %42 = vector.broadcast %cst_27 : f32 to vector<8x1xf32>
    %43 = arith.divf %41, %42 : vector<8x1xf32>
    %44 = vector.broadcast %43 : vector<8x1xf32> to vector<8x32xf32>
    %45 = arith.subf %37, %44 : vector<8x32xf32>
    %46 = arith.mulf %45, %45 : vector<8x32xf32>
    %cst_28 = arith.constant dense<0.000000e+00> : vector<8xf32>
    %47 = vector.multi_reduction <add>, %46, %cst_28 [1] : vector<8x32xf32> to vector<8xf32>
    %48 = vector.shape_cast %47 : vector<8xf32> to vector<8x1xf32>
    %cst_29 = arith.constant 3.200000e+01 : f32
    %49 = vector.broadcast %cst_29 : f32 to vector<8x1xf32>
    %50 = arith.divf %48, %49 : vector<8x1xf32>
    %cst_30 = arith.constant 9.99999974E-6 : f32
    %51 = vector.broadcast %cst_30 : f32 to vector<8x1xf32>
    %52 = arith.addf %50, %51 : vector<8x1xf32>
    %53 = math.rsqrt %52 : vector<8x1xf32>
    %54 = vector.broadcast %43 : vector<8x1xf32> to vector<8x32xf32>
    %55 = arith.subf %37, %54 : vector<8x32xf32>
    %56 = vector.broadcast %53 : vector<8x1xf32> to vector<8x32xf32>
    %57 = arith.mulf %55, %56 : vector<8x32xf32>
    %58 = vector.broadcast %38 : vector<1x32xf32> to vector<8x32xf32>
    %59 = arith.mulf %57, %58 : vector<8x32xf32>
    %60 = vector.broadcast %39 : vector<1x32xf32> to vector<8x32xf32>
    %61 = arith.addf %59, %60 : vector<8x32xf32>
    %62 = arith.truncf %61 : vector<8x32xf32> to vector<8x32xbf16>
    %c0_31 = arith.constant 0 : index
    %c0_32 = arith.constant 0 : index
    %63 = vector.load %arg11[%c0_31, %c0_32] : memref<32x64xbf16, #tpu.memory_space<vmem>>, vector<32x64xbf16>
    %cst_33 = arith.constant dense<0.000000e+00> : vector<8x64xf32>
    %64 = tpu.matmul %62, %63, %cst_33 {dimension_numbers = #tpu.dot_dimension_numbers<[1], [0], [0], [1], [0, 0, 1, 1], [], []>} : vector<8x32xbf16>, vector<32x64xbf16>, vector<8x64xf32> -> vector<8x64xf32>
    %c0_34 = arith.constant 0 : index
    %c0_35 = arith.constant 0 : index
    %65 = vector.load %arg12[%c0_34, %c0_35] : memref<1x64xf32, #tpu.memory_space<vmem>>, vector<1x64xf32>
    %66 = vector.broadcast %65 : vector<1x64xf32> to vector<8x64xf32>
    %67 = arith.addf %64, %66 : vector<8x64xf32>
    %cst_36 = arith.constant 0.000000e+00 : f32
    %68 = vector.broadcast %cst_36 : f32 to vector<8x64xf32>
    %69 = arith.maximumf %67, %68 : vector<8x64xf32>
    %70 = arith.truncf %69 : vector<8x64xf32> to vector<8x64xbf16>
    %c0_37 = arith.constant 0 : index
    %c0_38 = arith.constant 0 : index
    %71 = vector.load %arg13[%c0_37, %c0_38] : memref<64x32xbf16, #tpu.memory_space<vmem>>, vector<64x32xbf16>
    %cst_39 = arith.constant dense<0.000000e+00> : vector<8x32xf32>
    %72 = tpu.matmul %70, %71, %cst_39 {dimension_numbers = #tpu.dot_dimension_numbers<[1], [0], [0], [1], [0, 0, 1, 1], [], []>} : vector<8x64xbf16>, vector<64x32xbf16>, vector<8x32xf32> -> vector<8x32xf32>
    %c0_40 = arith.constant 0 : index
    %c0_41 = arith.constant 0 : index
    %73 = vector.load %arg14[%c0_40, %c0_41] : memref<1x32xf32, #tpu.memory_space<vmem>>, vector<1x32xf32>
    %74 = vector.broadcast %73 : vector<1x32xf32> to vector<8x32xf32>
    %75 = arith.addf %72, %74 : vector<8x32xf32>
    %cst_42 = arith.constant 0.000000e+00 : f32
    %76 = vector.broadcast %cst_42 : f32 to vector<8x32xf32>
    %77 = arith.maximumf %75, %76 : vector<8x32xf32>
    %78 = arith.addf %61, %77 : vector<8x32xf32>
    %c0_43 = arith.constant 0 : index
    %c0_44 = arith.constant 0 : index
    %79 = vector.load %arg15[%c0_43, %c0_44] : memref<1x32xf32, #tpu.memory_space<vmem>>, vector<1x32xf32>
    %c0_45 = arith.constant 0 : index
    %c0_46 = arith.constant 0 : index
    %80 = vector.load %arg16[%c0_45, %c0_46] : memref<1x32xf32, #tpu.memory_space<vmem>>, vector<1x32xf32>
    %cst_47 = arith.constant dense<0.000000e+00> : vector<8xf32>
    %81 = vector.multi_reduction <add>, %78, %cst_47 [1] : vector<8x32xf32> to vector<8xf32>
    %82 = vector.shape_cast %81 : vector<8xf32> to vector<8x1xf32>
    %cst_48 = arith.constant 3.200000e+01 : f32
    %83 = vector.broadcast %cst_48 : f32 to vector<8x1xf32>
    %84 = arith.divf %82, %83 : vector<8x1xf32>
    %85 = vector.broadcast %84 : vector<8x1xf32> to vector<8x32xf32>
    %86 = arith.subf %78, %85 : vector<8x32xf32>
    %87 = arith.mulf %86, %86 : vector<8x32xf32>
    %cst_49 = arith.constant dense<0.000000e+00> : vector<8xf32>
    %88 = vector.multi_reduction <add>, %87, %cst_49 [1] : vector<8x32xf32> to vector<8xf32>
    %89 = vector.shape_cast %88 : vector<8xf32> to vector<8x1xf32>
    %cst_50 = arith.constant 3.200000e+01 : f32
    %90 = vector.broadcast %cst_50 : f32 to vector<8x1xf32>
    %91 = arith.divf %89, %90 : vector<8x1xf32>
    %cst_51 = arith.constant 9.99999974E-6 : f32
    %92 = vector.broadcast %cst_51 : f32 to vector<8x1xf32>
    %93 = arith.addf %91, %92 : vector<8x1xf32>
    %94 = math.rsqrt %93 : vector<8x1xf32>
    %95 = vector.broadcast %84 : vector<8x1xf32> to vector<8x32xf32>
    %96 = arith.subf %78, %95 : vector<8x32xf32>
    %97 = vector.broadcast %94 : vector<8x1xf32> to vector<8x32xf32>
    %98 = arith.mulf %96, %97 : vector<8x32xf32>
    %99 = vector.broadcast %79 : vector<1x32xf32> to vector<8x32xf32>
    %100 = arith.mulf %98, %99 : vector<8x32xf32>
    %101 = vector.broadcast %80 : vector<1x32xf32> to vector<8x32xf32>
    %102 = arith.addf %100, %101 : vector<8x32xf32>
    %c0_52 = arith.constant 0 : index
    %c0_53 = arith.constant 0 : index
    %c0_54 = arith.constant 0 : index
    %103 = vector.load %arg17[%c0_52, %c0_53, %c0_54] : memref<1x8x32xf32, #tpu.memory_space<vmem>>, vector<1x8x32xf32>
    %104 = vector.shape_cast %103 : vector<1x8x32xf32> to vector<8x32xf32>
    %105 = vector.shape_cast %102 : vector<8x32xf32> to vector<1x8x32xf32>
    tpu.vector_store %arg17[%c0_52, %c0_53, %c0_54], %105 {strides = array<i32>} : memref<1x8x32xf32, #tpu.memory_space<vmem>>, vector<1x8x32xf32>,
    return
  }
  func.func @transform_0(%arg0: i32, %arg1: i32) -> (i32, i32, i32) {
    %c0_i32 = arith.constant 0 : i32
    %c0_i32_0 = arith.constant 0 : i32
    %c0_i32_1 = arith.constant 0 : i32
    return %arg0, %c0_i32, %c0_i32_0 : i32, i32, i32
  }
  func.func @transform_1(%arg0: i32, %arg1: i32) -> (i32, i32) {
    %c0_i32 = arith.constant 0 : i32
    %c0_i32_0 = arith.constant 0 : i32
    %c0_i32_1 = arith.constant 0 : i32
    return %c0_i32, %c0_i32_0 : i32, i32
  }
  func.func @transform_2(%arg0: i32, %arg1: i32) -> (i32, i32) {
    %c0_i32 = arith.constant 0 : i32
    %c0_i32_0 = arith.constant 0 : i32
    %c0_i32_1 = arith.constant 0 : i32
    return %c0_i32, %c0_i32_0 : i32, i32
  }
  func.func @transform_3(%arg0: i32, %arg1: i32) -> (i32, i32) {
    %c0_i32 = arith.constant 0 : i32
    %c0_i32_0 = arith.constant 0 : i32
    %c0_i32_1 = arith.constant 0 : i32
    return %c0_i32, %c0_i32_0 : i32, i32
  }
  func.func @transform_4(%arg0: i32, %arg1: i32) -> (i32, i32) {
    %c0_i32 = arith.constant 0 : i32
    %c0_i32_0 = arith.constant 0 : i32
    %c0_i32_1 = arith.constant 0 : i32
    return %c0_i32, %c0_i32_0 : i32, i32
  }
  func.func @transform_5(%arg0: i32, %arg1: i32) -> (i32, i32) {
    %c0_i32 = arith.constant 0 : i32
    %c0_i32_0 = arith.constant 0 : i32
    %c0_i32_1 = arith.constant 0 : i32
    return %c0_i32, %c0_i32_0 : i32, i32
  }
  func.func @transform_6(%arg0: i32, %arg1: i32) -> (i32, i32) {
    %c0_i32 = arith.constant 0 : i32
    %c0_i32_0 = arith.constant 0 : i32
    %c0_i32_1 = arith.constant 0 : i32
    return %c0_i32, %c0_i32_0 : i32, i32
  }
  func.func @transform_7(%arg0: i32, %arg1: i32) -> (i32, i32) {
    %c0_i32 = arith.constant 0 : i32
    %c0_i32_0 = arith.constant 0 : i32
    %c0_i32_1 = arith.constant 0 : i32
    return %c0_i32, %c0_i32_0 : i32, i32
  }
  func.func @transform_8(%arg0: i32, %arg1: i32) -> (i32, i32) {
    %c0_i32 = arith.constant 0 : i32
    %c0_i32_0 = arith.constant 0 : i32
    %c0_i32_1 = arith.constant 0 : i32
    return %c0_i32, %c0_i32_0 : i32, i32
  }
  func.func @transform_9(%arg0: i32, %arg1: i32) -> (i32, i32) {
    %c0_i32 = arith.constant 0 : i32
    %c0_i32_0 = arith.constant 0 : i32
    %c0_i32_1 = arith.constant 0 : i32
    return %c0_i32, %c0_i32_0 : i32, i32
  }
  func.func @transform_10(%arg0: i32, %arg1: i32) -> (i32, i32) {
    %c0_i32 = arith.constant 0 : i32
    %c0_i32_0 = arith.constant 0 : i32
    %c0_i32_1 = arith.constant 0 : i32
    return %c0_i32, %c0_i32_0 : i32, i32
  }
  func.func @transform_11(%arg0: i32, %arg1: i32) -> (i32, i32) {
    %c0_i32 = arith.constant 0 : i32
    %c0_i32_0 = arith.constant 0 : i32
    %c0_i32_1 = arith.constant 0 : i32
    return %c0_i32, %c0_i32_0 : i32, i32
  }
  func.func @transform_12(%arg0: i32, %arg1: i32) -> (i32, i32) {
    %c0_i32 = arith.constant 0 : i32
    %c0_i32_0 = arith.constant 0 : i32
    %c0_i32_1 = arith.constant 0 : i32
    return %c0_i32, %c0_i32_0 : i32, i32
  }
  func.func @transform_13(%arg0: i32, %arg1: i32) -> (i32, i32) {
    %c0_i32 = arith.constant 0 : i32
    %c0_i32_0 = arith.constant 0 : i32
    %c0_i32_1 = arith.constant 0 : i32
    return %c0_i32, %c0_i32_0 : i32, i32
  }
  func.func @transform_14(%arg0: i32, %arg1: i32) -> (i32, i32) {
    %c0_i32 = arith.constant 0 : i32
    %c0_i32_0 = arith.constant 0 : i32
    %c0_i32_1 = arith.constant 0 : i32
    return %c0_i32, %c0_i32_0 : i32, i32
  }
  func.func @transform_15(%arg0: i32, %arg1: i32) -> (i32, i32, i32) {
    %c0_i32 = arith.constant 0 : i32
    %c0_i32_0 = arith.constant 0 : i32
    return %arg0, %arg1, %c0_i32 : i32, i32, i32
  }
}

</mosaic_0001>

<bundles_post_ra>
// kernel: tpu_custom_call.1
= control target key start
LH: loop header
LB: loop body
LE: loop exit
PB: predicated region body
PF: predicated region fallthrough
CT: control target
= control target key end

     0   :  { %s2541_s0 = inlined_call_operand.vmem [shape: f32[2,8,32], index: 0, kind: input, shape index: {}]   ;;  %s2542_s1 = inlined_call_operand.vmem [shape: bf16[32,32], index: 1, kind: input, shape index: {}]   ;;  %s2543_s2 = inlined_call_operand.vmem [shape: f32[1,32], index: 2, kind: input, shape index: {}]   ;;  %s2544_s3 = inlined_call_operand.vmem [shape: bf16[32,64], index: 3, kind: input, shape index: {}]   ;;  %s2545_s4 = inlined_call_operand.vmem [shape: f32[1,64], index: 4, kind: input, shape index: {}]   ;;  %s2546_s5 = inlined_call_operand.hbm [shape: bf16[32,32], index: 5, kind: input, shape index: {}]   ;;  %s2547_s6 = inlined_call_operand.vmem [shape: f32[1,32], index: 6, kind: input, shape index: {}]   ;;  %s2548_s7 = inlined_call_operand.vmem [shape: f32[1,32], index: 7, kind: input, shape index: {}]   ;;  %s2549_s8 = inlined_call_operand.vmem [shape: f32[1,32], index: 8, kind: input, shape index: {}]   ;;  %s2550_s9 = inlined_call_operand.hbm [shape: bf16[32,64], index: 9, kind: input, shape index: {}]   ;;  %s2551_s10 = inlined_call_operand.vmem [shape: f32[1,64], index: 10, kind: input, shape index: {}]   ;;  %s2552_s11 = inlined_call_operand.vmem [shape: bf16[64,32], index: 11, kind: input, shape index: {}]   ;;  %s2553_s12 = inlined_call_operand.vmem [shape: f32[1,32], index: 12, kind: input, shape index: {}]   ;;  %s2554_s13 = inlined_call_operand.vmem [shape: f32[1,32], index: 13, kind: input, shape index: {}]   ;;  %s2555_s14 = inlined_call_operand.vmem [shape: f32[1,32], index: 14, kind: input, shape index: {}]   ;;  %s2556_s15 = inlined_call_operand.hbm [shape: f32[2,8,32], index: 15, kind: output, shape index: {}]  }
   0x1   :  { %2564 = sst [smem:[#allocation20_spill]] %s2555_s14 }
   0x2   :  { %20 = vsyncpa [#allocation5], 0 }
   0x3   :  { %21 = vsyncpa [#allocation8], 0 }
   0x4   :  { %22 = vsyncpa [#allocation6], 0 }
   0x5   :  { %24 = vsyncpa [#allocation6 + $0x1], 0  ;;  %s2113_s18 = smov 0   ;;  %s2115_s19 = smov 0  }
   0x6   :  { %s2117_s20 = smov 0   ;;  %s2119_s21 = smov 0  }
   0x7   :  { %s2121_s22 = smov 0   ;;  %s2123_s23 = smov 0  }
   0x8 LB: > { %2565 = sst [smem:[#allocation13_spill]] %s1997_s18  ;;  %s1654_s24 = sadd.s32 4294967295, %s2017_s23   ;;  %s2017_s23 = sphi %s2123_s23, %s30_s23   ;;  %s2013_s22 = sphi %s2121_s22, %s2583_s22   ;;  %s2009_s21 = sphi %s2119_s21, %s2582_s21   ;;  %s2005_s20 = sphi %s2117_s20, %s2581_s20   ;;  %s2001_s19 = sphi %s2115_s19, %s2585_s19   ;;  %s1997_s18 = sphi %s2113_s18, %s2584_s18  }
   0x9   : > { %2566 = sst [smem:[#allocation14_spill]] %s2005_s20  ;;  %s1655_s25 = sadd.s32 4294967294, %s2017_s23  }
   0xa   : > { %2567 = sst [smem:[#allocation15_spill]] %s2013_s22  ;;  %s42_s26 = sadd.s32 1, %s2013_s22 }
   0xb   : > { %2568 = sst [smem:[#allocation16_spill]] %s2017_s23  ;;  %s371_s27 = sadd.s32 1, %s2005_s20 }
   0xc   : > { %p44_p0 = scmp.ge.s32.totalorder %s42_s26, 2  ;;  %p381_p1 = scmp.ne.s32.totalorder %s2005_s20, %s2001_s19 }
   0xd   : > { %p382_p2 = scmp.eq.s32.totalorder %s1654_s24, 1  ;;  %p387_p3 = scmp.ne.s32.totalorder %s2001_s19, %s1997_s18 }
   0xe   : > { %s2587_s26 = smov (%p44_p0, %s42_s26), 0  ;;  %p388_p5 = scmp.eq.s32.totalorder %s1655_s25, 1 }
   0xf   : > { %2569 = sst [smem:[#allocation17_spill]] %s2587_s26  ;;  %p2153_p4 = por %p382_p2, %p381_p1 }
  0x10   : > { %s366_s29 = ssub.s32 %s2013_s22, %s2587_s26  ;;  %p1656_p6 = scmp.ge.s32.totalorder %s2017_s23, 1 }
  0x11   : > { %p369_p7 = scmp.eq.s32.totalorder %s366_s29, 0  ;;  %p2160_p8 = por %p388_p5, %p387_p3 }
  0x12   : > { %p395_p9 = scmp.lt.s32.totalorder %s2017_s23, 3  ;;  %p2172_p11 = scmp.eq.s32.totalorder %s1654_s24, 0 }
  0x13   : > { %s2571_s30 = scalar_select %p2160_p8, 1, 0 }
  0x14   : > { %s2166_s16 = scalar_select %p369_p7, %s2005_s20, %s371_s27  }
  0x15   : > { %2572 = sst [smem:[#allocation18_spill]] %s2571_s30  ;;  %p2168_p10 = pnand %p1656_p6, %p395_p9 }
  0x16   : > { %2573 = sst [smem:[#allocation19_spill]] %s2166_s16  ;;  %s418_s29 = sshll.u32 %s2546_s5, 4  ;;  %s419_s29 = int_to_ptr.hbm [resolvable:$true] %s418_s29 }
  0x17   : > { %p1752_p12 = pneg %p2168_p10  ;;  %s2019_s22 = smov [#allocation4]  }
  0x18   : > { %s420_s27 = sshll.u32 %s2019_s22, 4  ;;  %s441_s24 = sshll.u32 %s2550_s9, 4  ;;  %s421_s27 = int_to_ptr.vmem [resolvable:$true] %s420_s27  ;;  %s442_s24 = int_to_ptr.hbm [resolvable:$true] %s441_s24 }
  0x19   : > { %p1753_p13 = pnand %p2172_p11, %p1752_p12  ;;  %s2020_s30 = smov 64  }
  0x1a   : > { %s2021_s23 = smov 4   ;;  %s2022_s14 = smov [#allocation7]  }
  0x1b   : > { %1755 = dma.hbm_to_vmem [thread:$0]  (!%p1753_p13), %s419_s29, 256, %s421_s27, [#allocation5], %s2020_s30, %s2020_s30, %s2021_s23  }
  0x1c   : > { %s443_s26 = sshll.u32 %s2022_s14, 4  ;;  %481 = sbr.rel (%p2168_p10) target bundleno = 1969 (0x7b1), region = 80  ;;  %s444_s26 = int_to_ptr.vmem [resolvable:$true] %s443_s26 }
  0x1d   : > { %1758 = dma.hbm_to_vmem [thread:$0]  (!%p1753_p13), %s442_s24, 256, %s444_s26, [#allocation8], %s2020_s30, %s2020_s30, %s2021_s23  }
  0x21   : > { %1984 = dma.done.wait (%p2172_p11), [#allocation5], 256  }
  0x22   : > { %1986 = vsyncadd (%p2172_p11), [#allocation5], 4294967040 }
  0x23   : > { %1988 = dma.done.wait (%p2172_p11), [#allocation8], 256  }
  0x24   : > { %1990 = vsyncadd (%p2172_p11), [#allocation8], 4294967040  ;;  %p534_p0 = scmp.lt.s32.totalorder %s2009_s21, 1  ;;  %v1731_v0 = vld [vmem:[%s2544_s3 + $0x8] sm:$0xff]  ;;  %v1730_v2 = vld [vmem:[%s2544_s3] sm:$0xff]  ;;  %vm565_vm0 = vcmask 261120  }
  0x25   : > { %v1733_v1 = vld [vmem:[%s2542_s1 + $0x8] sm:$0xff]  ;;  %v1732_v3 = vld [vmem:[%s2542_s1] sm:$0xff]  ;;  %575 = vmatpush.bf16.msra.mxu0 %v1731_v0  ;;  %s2024_s16 = smov 104   ;;  %s2025_s17 = smov 120   ;;  %v2026_v15 = vmov 1983009808  }
  0x26   : > { %s535_s14 = scalar_select %p534_p0, %s2009_s21, 1  ;;  %874 = vmatpush.bf16.msra.mxu1 %v1733_v1  ;;  %v1840_v6 = vld [vmem:[%s2545_s4] ss:$0 sm:$0xff]  ;;  %v598_v16 = vunpack.c.l.s4 %v2026_v15  ;;  %vm593_vm1 = vcmask 1047556   ;;  %v2027_v27 = vmov 1934713408  }
  0x27   : > { %v1841_v7 = vld [vmem:[%s2543_s2] ss:$0 sm:$0xff]  ;;  %v622_v28 = vunpack.c.l.s4 %v2027_v27  ;;  %vm707_vm2 = vcmask 60416   ;;  %vm1010_vm3 = vcmask 64512   ;;  %s2028_s25 = smov 96   ;;  %vm1142_vm4 = vcmask 1043456  }
  0x28   : > { %s1664_s20 = sshll.u32 %s535_s14, 3  ;;  %v2235_v22 = vunpack.c.0.s8 %v598_v16  ;;  %s2029_s29 = smov 16   ;;  %vm1339_vm5 = vcmask 130048   ;;  %vm1341_vm6 = vcmask 195584   ;;  %vm1495_vm11 = vcmask 523264  }
  0x29   : > { %s537_s30 = scalar_lea.vmem %s2541_s0, %s1664_s20  ;;  %576 = vmatpush.bf16.msra.mxu0 %v1730_v2  ;;  %v2248_v37 = vunpack.c.0.s8 %v622_v28  ;;  %s2030_s27 = smov 8  }
  0x2a   : > { %v2213_v4 = vld [vmem:[%s537_s30] sm:$0xff]  ;;  %875 = vmatpush.bf16.msra.mxu1 %v1732_v3  ;;  %s2023_s30 = smov 112   ;;  %s2031_s18 = smov 24  }
  0x2b   : > { %v544_v5 = vpack.c.bf16 %v2213_v4, %v2213_v4  ;;  %s531_s23 = sand.u32 1, %s2001_s19   ;;  %s2576_s14 = sld [smem:[#allocation20_spill]] }
  0x2d   : > { %1673 = vmatmul.msk.bf16.vlgmr.msra.gmra.mxu0 %vm565_vm0, %v544_v5  ;;  %1682 = vmatmul.msk.bf16.vlgmr.msra.gmra.mxu1 %vm565_vm0, %v544_v5 }
  0xaa   : > { %v578_v8 = vpop.f32.mrf.mxu0  ;;  %v877_v9 = vpop.f32.mrf.mxu1 }
  0xab   : > { %v2225_v10 = vadd.f32 %v1840_v6, %v578_v8  ;;  %v878_v11 = vadd.f32 %v1841_v7, %v877_v9 }
  0xad   : > { %885 = vrot.lane.b32.xlu2 %v878_v11, %s2023_s30  ;;  %589 = vrot.lane.b32.xlu1 %v2225_v10, %s2024_s16  ;;  %v894_v20 = vrot.slane %v878_v11, 4  ;;  %v595_v35 = vrot.slane %v2225_v10, 4 }
  0xae   : > { %583 = vrot.lane.b32.xlu0 %v2225_v10, %s2025_s17 }
  0xb2   : > { %v580_v12 = vpop.f32.mrf.mxu0  ;;  %v879_v13 = vpop.f32.mrf.mxu1 }
  0xb5   : > { %882 = vrot.lane.b32.xlu1 %v878_v11, %s2025_s17  ;;  %888 = vrot.lane.b32.xlu2 %v878_v11, %s2024_s16  ;;  %s1727_s16 = sshll.u32 %s2009_s21, 3  ;;  %s1548_s17 = scalar_lea.sflag [#allocation6], %s531_s23 }
  0xb6   : > { %586 = vrot.lane.b32.xlu0 %v2225_v10, %s2023_s30  ;;  %s1663_s30 = sshll.u32 %s531_s23, 3 }
  0xb7   : > { %s533_s20 = scalar_lea.vmem [#allocation9], %s1663_s30  ;;  %s1951_s30 = scalar_lea.hbm %s2556_s15, 16 }
  0xb8   : > { %s1561_s21 = sshll.u32 %s533_s20, 4  ;;  %s1562_s21 = int_to_ptr.vmem [resolvable:$true] %s1561_s21 }
 0x107   : > { %v886_v14 = vpop.permute.xlu2 %885 }
 0x108   : > { %v891_v17 = vrot.slane %v886_v14, 4  ;;  %v895_v24 = vsel %vm593_vm1, %v886_v14, %v894_v20 }
 0x109   : > { %v903_v31 = vperm.slane %v895_v24, %v2235_v22 }
 0x10a   : > { %v893_v23 = vsel %vm593_vm1, %v891_v17, %v878_v11 }
 0x10b   : > { %v899_v29 = vperm.slane %v893_v23, %v2235_v22  ;;  %v930_v45 = vrot.slane %v903_v31, 4 }
 0x10d   : > { %v918_v41 = vrot.slane %v899_v29, 4 }
 0x10f   : > { %v889_v25 = vpop.permute.xlu2 %888 }
 0x110   : > { %v904_v32 = vrot.slane %v889_v25, 4 }
 0x11f   : > { %v2230_v18 = vpop.permute.xlu1 %589 }
 0x120   : > { %v2232_v19 = vpop.permute.xlu0 %583  ;;  %v605_v21 = vrot.slane %v2230_v18, 4 }
 0x121   : > { %v607_v26 = vrot.slane %v2232_v19, 4 }
 0x122   : > { %v606_v30 = vsel %vm593_vm1, %v605_v21, %v2232_v19 }
 0x123   : > { %v608_v33 = vsel %vm593_vm1, %v2230_v18, %v607_v26  ;;  %v612_v36 = vperm.slane %v606_v30, %v2235_v22 }
 0x124   : > { %v616_v46 = vperm.slane %v608_v33, %v2235_v22 }
 0x125   : > { %v617_v53 = vrot.slane %v612_v36, 4 }
 0x126   : > { %v629_v59 = vrot.slane %v616_v46, 4 }
 0x127   : > { %v883_v34 = vpop.permute.xlu1 %882 }
 0x128   : > { %v905_v38 = vsel %vm593_vm1, %v904_v32, %v883_v34  ;;  %v906_v39 = vrot.slane %v883_v34, 4  ;;  %v2251_v40 = vpop.permute.xlu0 %586 }
 0x129   : > { %v911_v42 = vperm.slane %v905_v38, %v2235_v22  ;;  %v592_v43 = vrot.slane %v2251_v40, 4  ;;  %v596_v44 = vsel %vm593_vm1, %v2251_v40, %v595_v35 }
 0x12a   : > { %v907_v47 = vsel %vm593_vm1, %v889_v25, %v906_v39  ;;  %v604_v48 = vperm.slane %v596_v44, %v2235_v22 }
 0x12b   : > { %v915_v49 = vperm.slane %v907_v47, %v2235_v22  ;;  %v916_v50 = vrot.slane %v911_v42, 4  ;;  %v919_v51 = vsel %vm593_vm1, %v911_v42, %v918_v41  ;;  %v594_v52 = vsel %vm593_vm1, %v592_v43, %v2225_v10 }
 0x12c   : > { %v600_v54 = vperm.slane %v594_v52, %v2235_v22  ;;  %v927_v56 = vperm.slane %v919_v51, %v2248_v37  ;;  %v631_v62 = vrot.slane %v604_v48, 4  ;;  %v630_v2 = vsel %vm593_vm1, %v629_v59, %v604_v48 }
 0x12d   : > { %v917_v55 = vsel %vm593_vm1, %v916_v50, %v899_v29  ;;  %v928_v57 = vrot.slane %v915_v49, 4  ;;  %v931_v58 = vsel %vm593_vm1, %v915_v49, %v930_v45  ;;  %v636_v12 = vperm.slane %v630_v2, %v2248_v37 }
 0x12e   : > { %v939_v60 = vperm.slane %v931_v58, %v2248_v37  ;;  %v618_v61 = vsel %vm593_vm1, %v617_v53, %v600_v54  ;;  %v619_v0 = vrot.slane %v600_v54, 4  ;;  %v923_v1 = vperm.slane %v917_v55, %v2248_v37 }
 0x12f   : > { %v929_v63 = vsel %vm593_vm1, %v928_v57, %v903_v31  ;;  %v942_v3 = vrot.slane %v927_v56, 4  ;;  %v624_v6 = vperm.slane %v618_v61, %v2248_v37  ;;  %v632_v9 = vsel %vm593_vm1, %v616_v46, %v631_v62 }
 0x130   : > { %v620_v5 = vsel %vm593_vm1, %v612_v36, %v619_v0  ;;  %v935_v7 = vperm.slane %v929_v63, %v2248_v37  ;;  %v946_v8 = vrot.slane %v939_v60, 4  ;;  %v940_v13 = vrot.slane %v923_v1, 4 }
 0x131   : > { %v628_v11 = vperm.slane %v620_v5, %v2248_v37  ;;  %v943_v14 = vsel %vm593_vm1, 0.0, %v942_v3  ;;  %v641_v15 = vrot.slane %v624_v6, 4  ;;  %v640_v17 = vperm.slane %v632_v9, %v2248_v37 }
 0x132   : > { %v944_v20 = vrot.slane %v935_v7, 4  ;;  %v947_v21 = vsel %vm593_vm1, 0.0, %v946_v8  ;;  %v948_v23 = vsel %vm593_vm1, %v942_v3, %v923_v1  ;;  %v645_v26 = vrot.slane %v636_v12, 4 }
 0x133   : > { %v643_v16 = vrot.slane %v628_v11, 4  ;;  %v647_v27 = vrot.slane %v640_v17, 4  ;;  %v941_v28 = vsel %vm593_vm1, 0.0, %v940_v13  ;;  %v953_v29 = vrot.slane %v943_v14, 4 }
 0x134   : > { %v964_v32 = vrot.slane %v947_v21, 4  ;;  %v642_v33 = vsel %vm593_vm1, 0.0, %v641_v15  ;;  %v945_v42 = vsel %vm593_vm1, 0.0, %v944_v20  ;;  %v646_v44 = vsel %vm593_vm1, 0.0, %v645_v26 }
 0x135   : > { %v644_v24 = vsel %vm593_vm1, 0.0, %v643_v16  ;;  %v649_v25 = vsel %vm593_vm1, %v643_v16, %v624_v6  ;;  %v648_v34 = vsel %vm593_vm1, 0.0, %v647_v27  ;;  %v660_v35 = vsel %vm593_vm1, %v647_v27, %v636_v12 }
 0x136   : > { %v653_v30 = vperm.slane %v649_v25, %v2235_v22  ;;  %v654_v31 = vrot.slane %v644_v24, 4  ;;  %v664_v39 = vperm.slane %v660_v35, %v2235_v22  ;;  %v665_v41 = vrot.slane %v648_v34, 4 }
 0x137   : > { %v952_v45 = vperm.slane %v948_v23, %v2235_v22  ;;  %v954_v46 = vsel %vm593_vm1, %v953_v29, %v941_v28  ;;  %v959_v49 = vsel %vm593_vm1, %v946_v8, %v935_v7  ;;  %v965_v53 = vsel %vm593_vm1, %v964_v32, %v945_v42 }
 0x138   : > { %v655_v36 = vsel %vm593_vm1, %v654_v31, %v642_v33  ;;  %v673_v38 = vrot.slane %v653_v30, 4  ;;  %v666_v47 = vsel %vm593_vm1, %v665_v41, %v646_v44  ;;  %v685_v48 = vrot.slane %v664_v39, 4 }
 0x139   : > { %v659_v43 = vperm.slane %v655_v36, %v2235_v22  ;;  %v670_v52 = vperm.slane %v666_v47, %v2235_v22  ;;  %v958_v55 = vperm.slane %v954_v46, %v2235_v22  ;;  %v963_v59 = vperm.slane %v959_v49, %v2235_v22 }
 0x13a   : > { %v972_v63 = vrot.slane %v952_v45, 4  ;;  %v969_v1 = vperm.slane %v965_v53, %v2235_v22 }
 0x13b   : > { %v671_v50 = vrot.slane %v659_v43, 4  ;;  %v674_v51 = vsel %vm593_vm1, %v659_v43, %v673_v38  ;;  %v683_v57 = vrot.slane %v670_v52, 4  ;;  %v686_v58 = vsel %vm593_vm1, %v670_v52, %v685_v48 }
 0x13c   : > { %v682_v54 = vperm.slane %v674_v51, %v2248_v37  ;;  %v694_v62 = vperm.slane %v686_v58, %v2248_v37  ;;  %v970_v8 = vrot.slane %v958_v55, 4  ;;  %v984_v13 = vrot.slane %v963_v59, 4 }
 0x13d   : > { %v672_v56 = vsel %vm593_vm1, %v671_v50, %v653_v30  ;;  %v684_v0 = vsel %vm593_vm1, %v683_v57, %v664_v39  ;;  %v973_v16 = vsel %vm593_vm1, %v958_v55, %v972_v63  ;;  %v982_v17 = vrot.slane %v969_v1, 4 }
 0x13e   : > { %v678_v60 = vperm.slane %v672_v56, %v2248_v37  ;;  %v701_v61 = vrot.slane %v682_v54, 4  ;;  %v690_v3 = vperm.slane %v684_v0, %v2248_v37  ;;  %v699_v5 = vrot.slane %v694_v62, 4 }
 0x13f   : > { %v971_v23 = vsel %vm593_vm1, %v970_v8, %v952_v45  ;;  %v981_v24 = vperm.slane %v973_v16, %v2248_v37  ;;  %v985_v25 = vsel %vm593_vm1, %v969_v1, %v984_v13  ;;  %v983_v26 = vsel %vm593_vm1, %v982_v17, %v963_v59 }
 0x140   : > { %v697_v2 = vrot.slane %v678_v60, 4  ;;  %v702_v6 = vsel %vm593_vm1, %v694_v62, %v701_v61  ;;  %v695_v9 = vrot.slane %v690_v3, 4  ;;  %v700_v12 = vsel %vm593_vm1, %v699_v5, %v682_v54 }
 0x141   : > { %v706_v7 = vpack.c.bf16 %v702_v6, %v702_v6  ;;  %v705_v15 = vpack.c.bf16 %v700_v12, %v700_v12  ;;  %v977_v27 = vperm.slane %v971_v23, %v2248_v37  ;;  %v993_v28 = vperm.slane %v985_v25, %v2248_v37 }
 0x142   : > { %v698_v11 = vsel %vm593_vm1, %v690_v3, %v697_v2  ;;  %v696_v20 = vsel %vm593_vm1, %v695_v9, %v678_v60  ;;  %v989_v30 = vperm.slane %v983_v26, %v2248_v37  ;;  %v1000_v31 = vrot.slane %v981_v24, 4 }
 0x143   : > { %v704_v14 = vpack.c.bf16 %v698_v11, %v698_v11  ;;  %711 = vst.msk [vmem:[#allocation2 + $0xc] sm:$0xf] %vm707_vm2, %v706_v7  ;;  %v703_v21 = vpack.c.bf16 %v696_v20, %v696_v20  ;;  %v996_v34 = vrot.slane %v977_v27, 4  ;;  %v998_v38 = vrot.slane %v993_v28, 4 }
 0x144   : > { %710 = vst.msk [vmem:[#allocation2 + $0x8] sm:$0xf] %vm707_vm2, %v705_v15  ;;  %v994_v42 = vrot.slane %v989_v30, 4  ;;  %v1001_v43 = vsel %vm593_vm1, %v993_v28, %v1000_v31  ;;  %v1830_v0 = vpack.i.bf16 %v2232_v19, %v2225_v10  ;;  %v1835_v1 = vpack.i.bf16 %v2230_v18, %v2251_v40 }
 0x145   : > { %709 = vst.msk [vmem:[#allocation2 + $0x4] sm:$0xf] %vm707_vm2, %v704_v14  ;;  %v997_v45 = vsel %vm593_vm1, %v989_v30, %v996_v34  ;;  %v999_v46 = vsel %vm593_vm1, %v998_v38, %v981_v24  ;;  %v1005_v47 = vpack.c.bf16 %v1001_v43, %v1001_v43 }
 0x146   : > { %708 = vst.msk [vmem:[#allocation2] sm:$0xf] %vm707_vm2, %v703_v21  ;;  %v995_v48 = vsel %vm593_vm1, %v994_v42, %v977_v27  ;;  %v1003_v49 = vpack.c.bf16 %v997_v45, %v997_v45  ;;  %v1004_v50 = vpack.c.bf16 %v999_v46, %v999_v46 }
 0x147   : > { %v1002_v51 = vpack.c.bf16 %v995_v48, %v995_v48 }
 0x14a   : > { %v1009_v29 = vld [vmem:[#allocation2 + $0xc] sm:$0xf] }
 0x14b   : > { %v1072_v32 = vsel %vm1010_vm3, %v1009_v29, 0  ;;  %v1008_v35 = vld [vmem:[#allocation2 + $0x8] sm:$0xf] }
 0x14c   : > { %1081 = vmatpush.bf16.xpose.msrb.mxu1 %v1072_v32  ;;  %v1007_v33 = vld [vmem:[#allocation2 + $0x4] sm:$0xf]  ;;  %v1053_v39 = vsel %vm1010_vm3, %v1008_v35, 0 }
 0x14d   : > { %v1034_v36 = vsel %vm1010_vm3, %v1007_v33, 0  ;;  %v1006_v41 = vld [vmem:[#allocation2] sm:$0xf]  ;;  %1062 = vmatpush.bf16.xpose.msrb.mxu0 %v1053_v39 }
 0x14e   : > { %1043 = vmatpush.bf16.xpose.msra.mxu3 %v1034_v36  ;;  %v1015_v44 = vsel %vm1010_vm3, %v1006_v41, 0 }
 0x14f   : > { %1024 = vmatpush.bf16.xpose.msra.mxu2 %v1015_v44 }
 0x153   : > { %1686 = vmatmul.msk.bf16.vlgmr.msrb.gmra.mxu1 %vm1010_vm3, %v1005_v47 }
 0x154   : > { %1685 = vmatmul.msk.bf16.vlgmr.msrb.gmra.mxu0 %vm1010_vm3, %v1004_v50 }
 0x155   : > { %1684 = vmatmul.msk.bf16.vlgmr.msra.gmra.mxu3 %vm1010_vm3, %v1003_v49 }
 0x156   : > { %1683 = vmatmul.msk.bf16.vlgmr.msra.gmra.mxu2 %vm1010_vm3, %v1002_v51 }
 0x1d0   : > { %v1083_v52 = vpop.f32.mrf.mxu1 }
 0x1d1   : > { %v1064_v53 = vpop.f32.mrf.mxu0  ;;  %v1096_v61 = vsel %vm1010_vm3, %v1083_v52, -inf }
 0x1d2   : > { %v1093_v54 = vsel %vm1010_vm3, %v1064_v53, -inf }
 0x1d3   : > { %1094 = vmax.xlane.f32.xlu2 %v1093_v54 }
 0x1d8   : > { %v1085_v55 = vpop.f32.mrf.mxu1  ;;  %v1045_v56 = vpop.f32.mrf.mxu3 }
 0x1d9   : > { %v1090_v57 = vsel %vm1010_vm3, %v1045_v56, -inf  ;;  %v1026_v58 = vpop.f32.mrf.mxu2  ;;  %v1066_v59 = vpop.f32.mrf.mxu0 }
 0x1da   : > { %1091 = vmax.xlane.f32.xlu1 %v1090_v57  ;;  %v1087_v60 = vsel %vm1010_vm3, %v1026_v58, -inf }
 0x1db   : > { %1088 = vmax.xlane.f32.xlu0 %v1087_v60  ;;  %1097 = vmax.xlane.f32.xlu2 %v1096_v61 }
 0x1e0   : > { %v1047_v62 = vpop.f32.mrf.mxu3 }
 0x1e1   : > { %v1028_v63 = vpop.f32.mrf.mxu2 }
 0x1ef   : > { %1831 = vrot.lane.b32.xlu0 %v1830_v0, %s2028_s25 }
 0x1f3   : > { %1836 = vrot.lane.b32.xlu1 %v1835_v1, %s2028_s25 }
 0x246   : > { %v1095_v2 = vpop.xlane.xlu2 %1094 }
 0x247   : > { %v1101_v3 = vsub.f32 %v1064_v53, %v1095_v2 }
 0x249   : > { %v1107_v5 = vmul.f32 1.442695, %v1101_v3 }
 0x24b   : > { %1849 = vpow2.f32 %v1107_v5 }
 0x24d   : > { %v1092_v7 = vpop.xlane.xlu1 %1091 }
 0x24e   : > { %v1089_v6 = vpop.xlane.xlu0 %1088  ;;  %v1100_v11 = vsub.f32 %v1045_v56, %v1092_v7  ;;  %v1098_v19 = vpop.xlane.xlu2 %1097 }
 0x24f   : > { %v1099_v8 = vsub.f32 %v1026_v58, %v1089_v6  ;;  %v1102_v18 = vsub.f32 %v1083_v52, %v1098_v19 }
 0x250   : > { %v1105_v13 = vmul.f32 1.442695, %v1100_v11 }
 0x251   : > { %v1103_v9 = vmul.f32 1.442695, %v1099_v8  ;;  %v2348_v12 = vpop.eup %1849  ;;  %v1109_v15 = vmul.f32 1.442695, %v1102_v18 }
 0x252   : > { %v1117_v10 = vsel %vm1010_vm3, %v2348_v12, 0.0 }
 0x253   : > { %1851 = vpow2.f32 %v1103_v9  ;;  %1118 = vadd.xlane.f32.xlu0 %v1117_v10 }
 0x254   : > { %1853 = vpow2.f32 %v1105_v13 }
 0x255   : > { %1855 = vpow2.f32 %v1109_v15 }
 0x259   : > { %v2352_v40 = vpop.eup %1851 }
 0x25a   : > { %v1111_v14 = vsel %vm1010_vm3, %v2352_v40, 0.0  ;;  %v2356_v16 = vpop.eup %1853 }
 0x25b   : > { %1112 = vadd.xlane.f32.xlu2 %v1111_v14  ;;  %v1114_v23 = vsel %vm1010_vm3, %v2356_v16, 0.0  ;;  %v2360_v29 = vpop.eup %1855 }
 0x25c   : > { %v1120_v39 = vsel %vm1010_vm3, %v2360_v29, 0.0 }
 0x261   : > { %v1832_v17 = vpop.permute.xlu0 %1831 }
 0x262   : > { %v1834_v20 = vunpack.i.h.bf16 %v1832_v17  ;;  %v1833_v21 = vunpack.i.l.bf16 %v1832_v17 }
 0x263   : > { %1115 = vadd.xlane.f32.xlu2 %v1114_v23 }
 0x264   : > { %v738_v25 = vrot.slane %v1834_v20, 4  ;;  %v726_v26 = vrot.slane %v1833_v21, 4 }
 0x265   : > { %v1837_v24 = vpop.permute.xlu1 %1836 }
 0x266   : > { %v1839_v27 = vunpack.i.h.bf16 %v1837_v24  ;;  %v1838_v28 = vunpack.i.l.bf16 %v1837_v24 }
 0x268   : > { %v736_v30 = vrot.slane %v1839_v27, 4  ;;  %v724_v31 = vrot.slane %v1838_v28, 4  ;;  %v727_v32 = vsel %vm593_vm1, %v1838_v28, %v726_v26  ;;  %v739_v33 = vsel %vm593_vm1, %v1839_v27, %v738_v25 }
 0x269   : > { %v735_v34 = vperm.slane %v727_v32, %v2235_v22  ;;  %v747_v35 = vperm.slane %v739_v33, %v2235_v22 }
 0x26a   : > { %v725_v36 = vsel %vm593_vm1, %v724_v31, %v1833_v21  ;;  %v737_v38 = vsel %vm593_vm1, %v736_v30, %v1834_v20 }
 0x26b   : > { %v731_v41 = vperm.slane %v725_v36, %v2235_v22  ;;  %v743_v42 = vperm.slane %v737_v38, %v2235_v22  ;;  %v760_v43 = vrot.slane %v747_v35, 4  ;;  %v762_v44 = vrot.slane %v735_v34, 4  ;;  %1121 = vadd.xlane.f32.xlu2 %v1120_v39 }
 0x26d   : > { %v748_v45 = vrot.slane %v743_v42, 4  ;;  %v750_v46 = vrot.slane %v731_v41, 4  ;;  %v761_v47 = vsel %vm593_vm1, %v760_v43, %v735_v34  ;;  %v763_v48 = vsel %vm593_vm1, %v747_v35, %v762_v44 }
 0x26e   : > { %v767_v49 = vperm.slane %v761_v47, %v2248_v37  ;;  %v771_v50 = vperm.slane %v763_v48, %v2248_v37 }
 0x26f   : > { %v749_v51 = vsel %vm593_vm1, %v748_v45, %v731_v41  ;;  %v751_v52 = vsel %vm593_vm1, %v743_v42, %v750_v46 }
 0x270   : > { %v755_v53 = vperm.slane %v749_v51, %v2248_v37  ;;  %v759_v54 = vperm.slane %v751_v52, %v2248_v37  ;;  %v776_v55 = vrot.slane %v767_v49, 4  ;;  %v778_v56 = vrot.slane %v771_v50, 4 }
 0x272   : > { %v772_v57 = vrot.slane %v755_v53, 4  ;;  %v774_v58 = vrot.slane %v759_v54, 4  ;;  %v779_v59 = vsel %vm593_vm1, 0.0, %v778_v56  ;;  %v791_v60 = vsel %vm593_vm1, %v778_v56, %v767_v49 }
 0x273   : > { %v796_v61 = vrot.slane %v779_v59, 4  ;;  %v777_v63 = vsel %vm593_vm1, 0.0, %v776_v55  ;;  %v795_v1 = vperm.slane %v791_v60, %v2235_v22 }
 0x274   : > { %v775_v62 = vsel %vm593_vm1, 0.0, %v774_v58  ;;  %v780_v0 = vsel %vm593_vm1, %v774_v58, %v755_v53  ;;  %v773_v6 = vsel %vm593_vm1, 0.0, %v772_v57 }
 0x275   : > { %v784_v2 = vperm.slane %v780_v0, %v2235_v22  ;;  %v785_v3 = vrot.slane %v775_v62, 4  ;;  %v797_v5 = vsel %vm593_vm1, %v796_v61, %v777_v63  ;;  %v816_v8 = vrot.slane %v795_v1, 4 }
 0x276   : > { %v801_v7 = vperm.slane %v797_v5, %v2235_v22 }
 0x277   : > { %v786_v9 = vsel %vm593_vm1, %v785_v3, %v773_v6  ;;  %v804_v11 = vrot.slane %v784_v2, 4 }
 0x278   : > { %v790_v10 = vperm.slane %v786_v9, %v2235_v22  ;;  %v814_v19 = vrot.slane %v801_v7, 4  ;;  %v817_v13 = vsel %vm593_vm1, %v801_v7, %v816_v8 }
 0x279   : > { %v825_v18 = vperm.slane %v817_v13, %v2248_v37 }
 0x27a   : > { %v802_v14 = vrot.slane %v790_v10, 4  ;;  %v805_v15 = vsel %vm593_vm1, %v790_v10, %v804_v11  ;;  %v815_v17 = vsel %vm593_vm1, %v814_v19, %v795_v1 }
 0x27b   : > { %v813_v20 = vperm.slane %v805_v15, %v2248_v37  ;;  %v821_v21 = vperm.slane %v815_v17, %v2248_v37  ;;  %v830_v23 = vrot.slane %v825_v18, 4 }
 0x27c   : > { %v803_v24 = vsel %vm593_vm1, %v802_v14, %v784_v2 }
 0x27d   : > { %v809_v25 = vperm.slane %v803_v24, %v2248_v37  ;;  %v826_v26 = vrot.slane %v821_v21, 4  ;;  %v831_v27 = vsel %vm593_vm1, %v830_v23, %v813_v20  ;;  %v832_v28 = vrot.slane %v813_v20, 4 }
 0x27e   : > { %v836_v30 = vpack.c.bf16 %v831_v27, %v831_v27 }
 0x27f   : > { %v827_v31 = vsel %vm593_vm1, %v826_v26, %v809_v25  ;;  %v828_v32 = vrot.slane %v809_v25, 4  ;;  %v833_v33 = vsel %vm593_vm1, %v825_v18, %v832_v28 }
 0x280   : > { %v834_v34 = vpack.c.bf16 %v827_v31, %v827_v31  ;;  %v837_v35 = vpack.c.bf16 %v833_v33, %v833_v33  ;;  %840 = vst.msk [vmem:[#allocation3 + $0x8] sm:$0xf] %vm707_vm2, %v836_v30 }
 0x281   : > { %v829_v36 = vsel %vm593_vm1, %v821_v21, %v828_v32 }
 0x282   : > { %v835_v38 = vpack.c.bf16 %v829_v36, %v829_v36  ;;  %841 = vst.msk [vmem:[#allocation3 + $0xc] sm:$0xf] %vm707_vm2, %v837_v35 }
 0x283   : > { %838 = vst.msk [vmem:[#allocation3] sm:$0xf] %vm707_vm2, %v834_v34 }
 0x284   : > { %839 = vst.msk [vmem:[#allocation3 + $0x4] sm:$0xf] %vm707_vm2, %v835_v38 }
 0x287   : > { %v1137_v39 = vld [vmem:[#allocation3 + $0x8] sm:$0xf] }
 0x288   : > { %v1182_v41 = vsel %vm1142_vm4, %v1137_v39, 0 }
 0x289   : > { %1191 = vmatpush.bf16.msra.mxu0 %v1182_v41  ;;  %v1138_v42 = vld [vmem:[#allocation3 + $0xc] sm:$0xf] }
 0x28a   : > { %v1135_v43 = vld [vmem:[#allocation3] sm:$0xf]  ;;  %v1201_v44 = vsel %vm1142_vm4, %v1138_v42, 0 }
 0x28b   : > { %v1144_v45 = vsel %vm1142_vm4, %v1135_v43, 0  ;;  %1210 = vmatpush.bf16.msra.mxu1 %v1201_v44  ;;  %v1136_v46 = vld [vmem:[#allocation3 + $0x4] sm:$0xf] }
 0x28c   : > { %1153 = vmatpush.bf16.msrb.mxu2 %v1144_v45  ;;  %v1163_v47 = vsel %vm1142_vm4, %v1136_v46, 0 }
 0x28d   : > { %1172 = vmatpush.bf16.msrb.mxu3 %v1163_v47 }
 0x2c6   : > { %v1119_v48 = vpop.xlane.xlu0 %1118 }
 0x2c7   : > { %1857 = vrcp.f32 %v1119_v48 }
 0x2cd   : > { %v1858_v49 = vpop.eup %1857 }
 0x2ce   : > { %v1113_v50 = vpop.xlane.xlu2 %1112  ;;  %v1129_v51 = vmul.f32 %v1858_v49, %v2348_v12 }
 0x2cf   : > { %1859 = vrcp.f32 %v1113_v50 }
 0x2d0   : > { %v1133_v52 = vpack.c.bf16 %v1129_v51, %v1129_v51 }
 0x2d2   : > { %1689 = vmatmul.msk.bf16.vlgmr.msra.gmra.mxu0 %vm1010_vm3, %v1133_v52 }
 0x2d5   : > { %v1860_v53 = vpop.eup %1859 }
 0x2d6   : > { %v1127_v54 = vmul.f32 %v1860_v53, %v2352_v40  ;;  %v1116_v55 = vpop.xlane.xlu2 %1115 }
 0x2d7   : > { %1861 = vrcp.f32 %v1116_v55 }
 0x2d8   : > { %v1131_v56 = vpack.c.bf16 %v1127_v54, %v1127_v54 }
 0x2da   : > { %1687 = vmatmul.msk.bf16.vlgmr.msrb.gmra.mxu2 %vm1010_vm3, %v1131_v56 }
 0x2dd   : > { %v1862_v57 = vpop.eup %1861 }
 0x2de   : > { %v1128_v58 = vmul.f32 %v1862_v57, %v2356_v16  ;;  %v1122_v59 = vpop.xlane.xlu2 %1121 }
 0x2df   : > { %1863 = vrcp.f32 %v1122_v59 }
 0x2e0   : > { %v1132_v60 = vpack.c.bf16 %v1128_v58, %v1128_v58 }
 0x2e2   : > { %1688 = vmatmul.msk.bf16.vlgmr.msrb.gmra.mxu3 %vm1010_vm3, %v1132_v60 }
 0x2e5   : > { %v1864_v12 = vpop.eup %1863 }
 0x2e6   : > { %v1130_v61 = vmul.f32 %v1864_v12, %v2360_v29 }
 0x2e8   : > { %v1134_v62 = vpack.c.bf16 %v1130_v61, %v1130_v61 }
 0x2ea   : > { %1690 = vmatmul.msk.bf16.vlgmr.msra.gmra.mxu1 %vm1010_vm3, %v1134_v62 }
 0x34f   : > { %v1193_v40 = vpop.f32.mrf.mxu0 }
 0x350   : > { %v1216_v2 = vrot.slane %v1193_v40, 4 }
 0x357   : > { %v1195_v63 = vpop.f32.mrf.mxu0 }
 0x35d   : > { %v1155_v0 = vpop.f32.mrf.mxu2 }
 0x35e   : > { %v1218_v1 = vrot.slane %v1155_v0, 4  ;;  %v1217_v16 = vsel %vm593_vm1, %v1216_v2, %v1155_v0 }
 0x35f   : > { %v1223_v9 = vperm.slane %v1217_v16, %v2235_v22 }
 0x360   : > { %v1219_v3 = vsel %vm593_vm1, %v1193_v40, %v1218_v1 }
 0x361   : > { %v1227_v5 = vperm.slane %v1219_v3, %v2235_v22  ;;  %v1242_v14 = vrot.slane %v1223_v9, 4 }
 0x363   : > { %v1254_v19 = vrot.slane %v1227_v5, 4 }
 0x365   : > { %v1157_v6 = vpop.f32.mrf.mxu2  ;;  %v1174_v7 = vpop.f32.mrf.mxu3 }
 0x366   : > { %v1230_v8 = vrot.slane %v1174_v7, 4  ;;  %v1735_v6 = vld [vmem:[#allocation4 + $0x8] sm:$0xff] }
 0x367   : > { %v1212_v29 = vpop.f32.mrf.mxu1  ;;  %1373 = vmatpush.bf16.msra.mxu2 %v1735_v6 }
 0x368   : > { %v1228_v11 = vrot.slane %v1212_v29, 4  ;;  %v1231_v10 = vsel %vm593_vm1, %v1212_v29, %v1230_v8 }
 0x369   : > { %v1239_v13 = vperm.slane %v1231_v10, %v2235_v22 }
 0x36a   : > { %v1229_v18 = vsel %vm593_vm1, %v1228_v11, %v1174_v7  ;;  %v1734_v7 = vld [vmem:[#allocation4] sm:$0xff] }
 0x36b   : > { %v1235_v15 = vperm.slane %v1229_v18, %v2235_v22  ;;  %v1252_v17 = vrot.slane %v1239_v13, 4  ;;  %v1255_v20 = vsel %vm593_vm1, %v1239_v13, %v1254_v19  ;;  %1374 = vmatpush.bf16.msra.mxu2 %v1734_v7  ;;  %v1842_v13 = vld [vmem:[%s2547_s6] ss:$0 sm:$0xff] }
 0x36c   : > { %v1263_v21 = vperm.slane %v1255_v20, %v2248_v37 }
 0x36d   : > { %v1240_v23 = vrot.slane %v1235_v15, 4  ;;  %v1243_v24 = vsel %vm593_vm1, %v1235_v15, %v1242_v14  ;;  %v1253_v25 = vsel %vm593_vm1, %v1252_v17, %v1227_v5  ;;  %v1176_v26 = vpop.f32.mrf.mxu3 }
 0x36e   : > { %v1251_v27 = vperm.slane %v1243_v24, %v2248_v37  ;;  %v1259_v28 = vperm.slane %v1253_v25, %v2248_v37  ;;  %v1270_v30 = vrot.slane %v1263_v21, 4  ;;  %v2032_v21 = vmov 32.0  }
 0x36f   : > { %v1241_v31 = vsel %vm593_vm1, %v1240_v23, %v1223_v9  ;;  %v1214_v32 = vpop.f32.mrf.mxu1  ;;  %1865 = vrcp.f32 %v2032_v21  ;;  %v1848_v21 = vld [vmem:[%s2576_s14] ss:$0 sm:$0xff] }
 0x370   : > { %v1247_v33 = vperm.slane %v1241_v31, %v2248_v37  ;;  %v1266_v34 = vrot.slane %v1251_v27, 4  ;;  %v1268_v35 = vrot.slane %v1259_v28, 4  ;;  %v1271_v36 = vsel %vm593_vm1, 0.0, %v1270_v30 }
 0x371   : > { %v1283_v38 = vsel %vm593_vm1, %v1270_v30, %v1259_v28  ;;  %v1288_v39 = vrot.slane %v1271_v36, 4  ;;  %v1741_v36 = vld [vmem:[%s2552_s11 + $0x18] sm:$0xff] }
 0x372   : > { %v1264_v41 = vrot.slane %v1247_v33, 4  ;;  %v1267_v42 = vsel %vm593_vm1, 0.0, %v1266_v34  ;;  %v1269_v43 = vsel %vm593_vm1, 0.0, %v1268_v35  ;;  %v1287_v44 = vperm.slane %v1283_v38, %v2235_v22  ;;  %v1736_v35 = vld [vmem:[#allocation7] sm:$0xff]  ;;  %1503 = vmatpush.bf16.msrb.mxu0 %v1741_v36 }
 0x373   : > { %v1277_v45 = vrot.slane %v1267_v42, 4  ;;  %v1272_v46 = vsel %vm593_vm1, %v1266_v34, %v1247_v33  ;;  %v1289_v47 = vsel %vm593_vm1, %v1288_v39, %v1269_v43  ;;  %v1737_v34 = vld [vmem:[#allocation7 + $0x8] sm:$0xff]  ;;  %v1739_v43 = vld [vmem:[%s2552_s11 + $0x8] sm:$0xff] }
 0x374   : > { %v1265_v48 = vsel %vm593_vm1, 0.0, %v1264_v41  ;;  %v1276_v49 = vperm.slane %v1272_v46, %v2235_v22  ;;  %v1293_v50 = vperm.slane %v1289_v47, %v2235_v22  ;;  %v1308_v51 = vrot.slane %v1287_v44, 4  ;;  %1450 = vmatpush.bf16.msra.mxu3 %v1737_v34  ;;  %v1740_v41 = vld [vmem:[%s2552_s11 + $0x10] sm:$0xff] }
 0x375   : > { %v1278_v52 = vsel %vm593_vm1, %v1277_v45, %v1265_v48  ;;  %v1866_v23 = vpop.eup %1865 }
 0x376   : > { %v1282_v53 = vperm.slane %v1278_v52, %v2235_v22  ;;  %v1296_v54 = vrot.slane %v1276_v49, 4  ;;  %v1309_v55 = vsel %vm593_vm1, %v1293_v50, %v1308_v51  ;;  %v1306_v56 = vrot.slane %v1293_v50, 4  ;;  %1504 = vmatpush.bf16.msrb.mxu0 %v1740_v41  ;;  %v1843_v50 = vld [vmem:[%s2548_s7] ss:$0 sm:$0xff] }
 0x377   : > { %v1317_v57 = vperm.slane %v1309_v55, %v2248_v37  ;;  %v1387_v24 = vmul.f32 32.0, %v1866_v23  ;;  %vm1391_vm7 = vweird.f32 %v1866_v23  ;;  %v1844_v52 = vld [vmem:[%s2549_s8] ss:$0 sm:$0xff] }
 0x378   : > { %v1297_v58 = vsel %vm593_vm1, %v1282_v53, %v1296_v54  ;;  %v1294_v59 = vrot.slane %v1282_v53, 4  ;;  %v1307_v60 = vsel %vm593_vm1, %v1306_v56, %v1287_v44  ;;  %1451 = vmatpush.bf16.msra.mxu3 %v1736_v35 }
 0x379   : > { %v1305_v12 = vperm.slane %v1297_v58, %v2248_v37  ;;  %v1322_v61 = vrot.slane %v1317_v57, 4  ;;  %v1313_v62 = vperm.slane %v1307_v60, %v2248_v37  ;;  %v1388_v25 = vsub.f32 1.0, %v1387_v24  ;;  %v1845_v58 = vld [vmem:[%s2551_s10] ss:$0 sm:$0xff] }
 0x37a   : > { %v1295_v40 = vsel %vm593_vm1, %v1294_v59, %v1276_v49  ;;  %1505 = vmatpush.bf16.msrb.mxu0 %v1739_v43 }
 0x37b   : > { %v1323_v22 = vsel %vm593_vm1, %v1322_v61, %v1305_v12  ;;  %v1301_v63 = vperm.slane %v1295_v40, %v2248_v37  ;;  %v1318_v0 = vrot.slane %v1313_v62, 4  ;;  %v1324_v16 = vrot.slane %v1305_v12, 4  ;;  %v1846_v40 = vld [vmem:[%s2553_s12] ss:$0 sm:$0xff] }
 0x37c   : > { %1331 = vrot.lane.b32.xlu2 %v1323_v22, %s2029_s29  ;;  %v1389_v26 = vmul.f32 %v1866_v23, %v1388_v25 }
 0x37d   : > { %v1320_v1 = vrot.slane %v1301_v63, 4  ;;  %v1319_v2 = vsel %vm593_vm1, %v1318_v0, %v1301_v63  ;;  %v1325_v5 = vsel %vm593_vm1, %v1317_v57, %v1324_v16  ;;  %v1738_v57 = vld [vmem:[%s2552_s11] sm:$0xff] }
 0x37e   : > { %v1390_v27 = vadd.f32 %v1866_v23, %v1389_v26  ;;  %1506 = vmatpush.bf16.msrb.mxu0 %v1738_v57 }
 0x37f   : > { %v1321_v3 = vsel %vm593_vm1, %v1313_v62, %v1320_v1 }
 0x380   : > { %1327 = vrot.lane.b32.xlu1 %v1321_v3, %s2030_s27  ;;  %v2463_v28 = vsel %vm1391_vm7, %v1866_v23, %v1390_v27 }
 0x388   : > { %1335 = vrot.lane.b32.xlu1 %v1325_v5, %s2031_s18  ;;  %s1559_s18 = scalar_lea.hbm %s2556_s15, %s1727_s16 }
 0x389   : > { %s1563_s22 = sshll.u32 %s1559_s18, 4  ;;  %s1564_s22 = int_to_ptr.hbm [resolvable:$true] %s1563_s22 }
 0x38a   : > { %s1945_s25 = sshra.s32 %s1564_s22, 4  ;;  %s1946_s25 = int_to_ptr.hbm [resolvable:$true] %s1945_s25 }
 0x38b   : > { %s1947_s16 = scalar_lea.hbm %s1946_s25, 8  ;;  %p1952_p5 = scmp.lt.s32.totalorder %s1946_s25, %s2556_s15 }
 0x38c   : > { %p1948_p1 = scmp.ne.s32.totalorder %s1946_s25, %s1947_s16  ;;  %p1953_p6 = scmp.lt.s32.totalorder %s1951_s30, %s1947_s16 }
 0x38e   : > { %p1949_p2 = pnand %p1948_p1, %p2153_p4  ;;  %p1954_p7 = por %p1953_p6, %p1952_p5 }
 0x390   : > { %p1950_p3 = pneg %p1949_p2 }
 0x392   : > { %p1955_p9 = pnand %p1954_p7, %p1950_p3 }
 0x3d6   : > { %v1332_v9 = vpop.permute.xlu2 %1331 }
 0x3f2   : > { %v1328_v37 = vpop.permute.xlu1 %1327 }
 0x3f3   : > { %v1338_v8 = vsel %vm1010_vm3, %v1319_v2, %v1328_v37 }
 0x3f4   : > { %v1340_v11 = vsel %vm1339_vm5, %v1338_v8, %v1332_v9 }
 0x3fa   : > { %v1336_v29 = vpop.permute.xlu1 %1335 }
 0x3fb   : > { %v1342_v10 = vsel %vm1341_vm6, %v1340_v11, %v1336_v29 }
 0x3fc   : > { %v1343_v19 = vpack.c.bf16 %v1342_v10, %v1342_v10 }
 0x3fe   : > { %1699 = vmatmul.msk.bf16.vlgmr.msra.gmra.mxu2 %vm565_vm0, %v1343_v19 }
 0x481   : > { %v1376_v18 = vpop.f32.mrf.mxu2 }
 0x482   : > { %v1377_v14 = vadd.f32 %v1842_v13, %v1376_v18 }
 0x484   : > { %v1380_v15 = vadd.f32 %v1377_v14, %v2213_v4 }
 0x486   : > { %v1383_v17 = vsel %vm565_vm0, %v1380_v15, 0.0 }
 0x487   : > { %1384 = vadd.xlane.f32.xlu1 %v1383_v17 }
 0x489   : > { %v1378_v20 = vpop.f32.mrf.mxu2 }
 0x4fa   : > { %v1385_v30 = vpop.xlane.xlu1 %1384 }
 0x4fb   : > { %v1393_v31 = vmul.f32 %v2463_v28, %v1385_v30 }
 0x4fd   : > { %v1394_v32 = vsub.f32 %v1380_v15, %v1393_v31  ;;  %v1847_v15 = vld [vmem:[%s2554_s13] ss:$0 sm:$0xff] }
 0x4ff   : > { %v1395_v33 = vmul.f32 %v1394_v32, %v1394_v32 }
 0x501   : > { %v1396_v4 = vsel %vm565_vm0, %v1395_v33, 0.0 }
 0x502   : > { %1397 = vadd.xlane.f32.xlu2 %v1396_v4 }
 0x575   : > { %v1398_v38 = vpop.xlane.xlu2 %1397 }
 0x576   : > { %v1399_v39 = vmul.f32 %v1398_v38, %v2463_v28 }
 0x578   : > { %v1400_v42 = vadd.f32 1e-05, %v1399_v39 }
 0x57a   : > { %1867 = vrsqrt.f32 %v1400_v42  ;;  %vm1407_vm9 = vweird.f32 %v1400_v42 }
 0x580   : > { %v1868_v44 = vpop.eup %1867 }
 0x581   : > { %v1402_v45 = vmul.f32 %v1868_v44, %v1400_v42  ;;  %vm1408_vm8 = vweird.f32 %v1868_v44 }
 0x582   : > { %vm1409_vm10 = vmor %vm1407_vm9, %vm1408_vm8 }
 0x583   : > { %v1403_v46 = vmul.f32 %v1868_v44, %v1402_v45 }
 0x585   : > { %v1404_v47 = vmul.f32 0.5, %v1403_v46 }
 0x587   : > { %v1405_v48 = vsub.f32 1.5, %v1404_v47 }
 0x589   : > { %v1406_v49 = vmul.f32 %v1868_v44, %v1405_v48 }
 0x58b   : > { %v1410_v51 = vsel %vm1409_vm10, %v1868_v44, %v1406_v49 }
 0x58c   : > { %v1411_v53 = vmul.f32 %v1410_v51, %v1394_v32 }
 0x58e   : > { %v1415_v54 = vmul.f32 %v1843_v50, %v1411_v53 }
 0x590   : > { %v1419_v55 = vadd.f32 %v1844_v52, %v1415_v54 }
 0x592   : > { %v1420_v56 = vpack.c.bf16 %v1419_v55, %v1419_v55 }
 0x594   : > { %1708 = vmatmul.msk.bf16.vlgmr.msra.gmra.mxu3 %vm565_vm0, %v1420_v56 }
 0x617   : > { %v1453_v59 = vpop.f32.mrf.mxu3 }
 0x618   : > { %v1454_v60 = vadd.f32 %v1845_v58, %v1453_v59 }
 0x61a   : > { %v1457_v12 = vmax.f32 %v1454_v60, 0.0 }
 0x61c   : > { %v1458_v61 = vpack.c.bf16 %v1457_v12, %v1457_v12 }
 0x61e   : > { %1725 = vmatmul.msk.bf16.vlgmr.msrb.gmra.mxu0 %vm1495_vm11, %v1458_v61 }
 0x61f   : > { %v1455_v62 = vpop.f32.mrf.mxu3 }
 0x69b   : > { %v1508_v22 = vpop.f32.mrf.mxu0 }
 0x69c   : > { %v1509_v63 = vadd.f32 %v1846_v40, %v1508_v22 }
 0x69e   : > { %v1512_v0 = vmax.f32 %v1509_v63, 0.0 }
 0x6a0   : > { %v1513_v1 = vadd.f32 %v1512_v0, %v1419_v55 }
 0x6a2   : > { %v1516_v2 = vsel %vm565_vm0, %v1513_v1, 0.0 }
 0x6a3   : > { %v1510_v3 = vpop.f32.mrf.mxu0  ;;  %1517 = vadd.xlane.f32.xlu0 %v1516_v2 }
 0x716   : > { %v1518_v16 = vpop.xlane.xlu0 %1517 }
 0x717   : > { %v1519_v5 = vmul.f32 %v1518_v16, %v2463_v28 }
 0x719   : > { %v1520_v6 = vsub.f32 %v1513_v1, %v1519_v5 }
 0x71b   : > { %v1521_v7 = vmul.f32 %v1520_v6, %v1520_v6 }
 0x71d   : > { %v1522_v37 = vsel %vm565_vm0, %v1521_v7, 0.0 }
 0x71e   : > { %1523 = vadd.xlane.f32.xlu0 %v1522_v37 }
 0x791   : > { %v1524_v8 = vpop.xlane.xlu0 %1523 }
 0x792   : > { %v1525_v9 = vmul.f32 %v1524_v8, %v2463_v28 }
 0x794   : > { %v1526_v29 = vadd.f32 1e-05, %v1525_v9 }
 0x796   : > { %1869 = vrsqrt.f32 %v1526_v29  ;;  %vm1533_vm13 = vweird.f32 %v1526_v29 }
 0x79c   : > { %v1870_v11 = vpop.eup %1869 }
 0x79d   : > { %v1528_v10 = vmul.f32 %v1870_v11, %v1526_v29  ;;  %vm1534_vm12 = vweird.f32 %v1870_v11 }
 0x79e   : > { %vm1535_vm14 = vmor %vm1533_vm13, %vm1534_vm12 }
 0x79f   : > { %v1529_v19 = vmul.f32 %v1870_v11, %v1528_v10 }
 0x7a1   : > { %v1530_v13 = vmul.f32 0.5, %v1529_v19 }
 0x7a3   : > { %v1531_v18 = vsub.f32 1.5, %v1530_v13 }
 0x7a5   : > { %v1532_v14 = vmul.f32 %v1870_v11, %v1531_v18 }
 0x7a7   : > { %v1536_v17 = vsel %vm1535_vm14, %v1870_v11, %v1532_v14 }
 0x7a8   : > { %v1537_v20 = vmul.f32 %v1536_v17, %v1520_v6 }
 0x7aa   : > { %v1541_v23 = vmul.f32 %v1847_v15, %v1537_v20 }
 0x7ac   : > { %v1545_v24 = vadd.f32 %v1848_v21, %v1541_v23 }
 0x7ae   : > { %1546 = vst.msk [vmem:[%s533_s20] sm:$0xff] %vm565_vm0, %v1545_v24 }
 0x7af   : > { %1958 = shalt.err (!%p1955_p9)
}
 0x7b0   : > { %1750 = dma.vmem_to_hbm [thread:$0]  (%p2153_p4), %s1562_s21, 128, %s1564_s22, %s1548_s17  }
 0x7b1 PF: > { %s2577_s23 = sld [smem:[#allocation16_spill]] }
 0x7b2   : > { %s2578_s26 = sld [smem:[#allocation13_spill]] }
 0x7b7   : > { %p1767_p10 = scmp.ge.s32.totalorder %s2577_s23, 2 }
 0x7b8   : > { %s1575_s20 = sand.u32 1, %s2578_s26  }
 0x7b9   : > { %p1760_p11 = pnand %p1767_p10, %p2160_p8  ;;  %s1576_s29 = scalar_lea.sflag [#allocation6], %s1575_s20 }
 0x7bb   : > { %p1761_p12 = pneg %p1760_p11 }
 0x7bd   : > { %1992 = dma.done.wait (%p1761_p12), %s1576_s29, 128  }
 0x7be   : > { %1994 = vsyncadd (%p1761_p12), %s1576_s29, 4294967168  ;;  %s30_s23 = sadd.s32 1, %s2577_s23   ;;  %s2580_s25 = sld [smem:[#allocation14_spill]] }
 0x7bf   : > { %p27_p13 = scmp.ge.s32.totalorder %s30_s23, 4   ;;  %s2581_s20 = sld [smem:[#allocation19_spill]] }
 0x7c0   : > { %s2582_s21 = sld [smem:[#allocation15_spill]]  ;;  %s2584_s18 = smov %s2001_s19 }
 0x7c1   : > { %s2583_s22 = sld [smem:[#allocation17_spill]]  ;;  %29 = sbr.rel (!%p27_p13) target bundleno = 8 (0x8), region = 128 }
 0x7c4   : > { %s2585_s19 = smov %s2580_s25 }
 0x7c6   :  { %1582 = vsyncpa [#allocation5], 1 }
 0x7c7   :  { %1584 = vsyncpa [#allocation5 + $0x1], 1 }
 0x7c8   :  { %1585 = vsyncpa [#allocation8], 1 }
 0x7c9   :  { %1586 = vsyncpa [#allocation6], 1 }
 0x7ca   :  { %1588 = vsyncpa [#allocation6 + $0x1], 1 }

// kernel: tpu_custom_call.1
= control target key start
LH: loop header
LB: loop body
LE: loop exit
PB: predicated region body
PF: predicated region fallthrough
CT: control target
= control target key end

     0   :  { %s2541_s0 = inlined_call_operand.vmem [shape: f32[2,8,32], index: 0, kind: input, shape index: {}]   ;;  %s2542_s1 = inlined_call_operand.vmem [shape: bf16[32,32], index: 1, kind: input, shape index: {}]   ;;  %s2543_s2 = inlined_call_operand.vmem [shape: f32[1,32], index: 2, kind: input, shape index: {}]   ;;  %s2544_s3 = inlined_call_operand.vmem [shape: bf16[32,64], index: 3, kind: input, shape index: {}]   ;;  %s2545_s4 = inlined_call_operand.vmem [shape: f32[1,64], index: 4, kind: input, shape index: {}]   ;;  %s2546_s5 = inlined_call_operand.hbm [shape: bf16[32,32], index: 5, kind: input, shape index: {}]   ;;  %s2547_s6 = inlined_call_operand.vmem [shape: f32[1,32], index: 6, kind: input, shape index: {}]   ;;  %s2548_s7 = inlined_call_operand.vmem [shape: f32[1,32], index: 7, kind: input, shape index: {}]   ;;  %s2549_s8 = inlined_call_operand.vmem [shape: f32[1,32], index: 8, kind: input, shape index: {}]   ;;  %s2550_s9 = inlined_call_operand.hbm [shape: bf16[32,64], index: 9, kind: input, shape index: {}]   ;;  %s2551_s10 = inlined_call_operand.vmem [shape: f32[1,64], index: 10, kind: input, shape index: {}]   ;;  %s2552_s11 = inlined_call_operand.vmem [shape: bf16[64,32], index: 11, kind: input, shape index: {}]   ;;  %s2553_s12 = inlined_call_operand.vmem [shape: f32[1,32], index: 12, kind: input, shape index: {}]   ;;  %s2554_s13 = inlined_call_operand.vmem [shape: f32[1,32], index: 13, kind: input, shape index: {}]   ;;  %s2555_s14 = inlined_call_operand.vmem [shape: f32[1,32], index: 14, kind: input, shape index: {}]   ;;  %s2556_s15 = inlined_call_operand.hbm [shape: f32[2,8,32], index: 15, kind: output, shape index: {}]  }
   0x1   :  { %2564 = sst [smem:[#allocation20_spill]] %s2555_s14 }
   0x2   :  { %20 = vsyncpa [#allocation5], 0 }
   0x3   :  { %21 = vsyncpa [#allocation8], 0 }
   0x4   :  { %22 = vsyncpa [#allocation6], 0 }
   0x5   :  { %24 = vsyncpa [#allocation6 + $0x1], 0  ;;  %s2113_s18 = smov 0   ;;  %s2115_s19 = smov 0  }
   0x6   :  { %s2117_s20 = smov 0   ;;  %s2119_s21 = smov 0  }
   0x7   :  { %s2121_s22 = smov 0   ;;  %s2123_s23 = smov 0  }
   0x8 LB: > { %2565 = sst [smem:[#allocation13_spill]] %s1997_s18  ;;  %s1654_s24 = sadd.s32 4294967295, %s2017_s23   ;;  %s2017_s23 = sphi %s2123_s23, %s30_s23   ;;  %s2013_s22 = sphi %s2121_s22, %s2583_s22   ;;  %s2009_s21 = sphi %s2119_s21, %s2582_s21   ;;  %s2005_s20 = sphi %s2117_s20, %s2581_s20   ;;  %s2001_s19 = sphi %s2115_s19, %s2585_s19   ;;  %s1997_s18 = sphi %s2113_s18, %s2584_s18  }
   0x9   : > { %2566 = sst [smem:[#allocation14_spill]] %s2005_s20  ;;  %s1655_s25 = sadd.s32 4294967294, %s2017_s23  }
   0xa   : > { %2567 = sst [smem:[#allocation15_spill]] %s2013_s22  ;;  %s42_s26 = sadd.s32 1, %s2013_s22 }
   0xb   : > { %2568 = sst [smem:[#allocation16_spill]] %s2017_s23  ;;  %s371_s27 = sadd.s32 1, %s2005_s20 }
   0xc   : > { %p44_p0 = scmp.ge.s32.totalorder %s42_s26, 2  ;;  %p381_p1 = scmp.ne.s32.totalorder %s2005_s20, %s2001_s19 }
   0xd   : > { %p382_p2 = scmp.eq.s32.totalorder %s1654_s24, 1  ;;  %p387_p3 = scmp.ne.s32.totalorder %s2001_s19, %s1997_s18 }
   0xe   : > { %s2587_s26 = smov (%p44_p0, %s42_s26), 0  ;;  %p388_p5 = scmp.eq.s32.totalorder %s1655_s25, 1 }
   0xf   : > { %2569 = sst [smem:[#allocation17_spill]] %s2587_s26  ;;  %p2153_p4 = por %p382_p2, %p381_p1 }
  0x10   : > { %s366_s29 = ssub.s32 %s2013_s22, %s2587_s26  ;;  %p1656_p6 = scmp.ge.s32.totalorder %s2017_s23, 1 }
  0x11   : > { %p369_p7 = scmp.eq.s32.totalorder %s366_s29, 0  ;;  %p2160_p8 = por %p388_p5, %p387_p3 }
  0x12   : > { %p395_p9 = scmp.lt.s32.totalorder %s2017_s23, 3  ;;  %p2172_p11 = scmp.eq.s32.totalorder %s1654_s24, 0 }
  0x13   : > { %s2571_s30 = scalar_select %p2160_p8, 1, 0 }
  0x14   : > { %s2166_s16 = scalar_select %p369_p7, %s2005_s20, %s371_s27  }
  0x15   : > { %2572 = sst [smem:[#allocation18_spill]] %s2571_s30  ;;  %p2168_p10 = pnand %p1656_p6, %p395_p9 }
  0x16   : > { %2573 = sst [smem:[#allocation19_spill]] %s2166_s16  ;;  %s418_s29 = sshll.u32 %s2546_s5, 4  ;;  %s419_s29 = int_to_ptr.hbm [resolvable:$true] %s418_s29 }
  0x17   : > { %p1752_p12 = pneg %p2168_p10  ;;  %s2019_s22 = smov [#allocation4]  }
  0x18   : > { %s420_s27 = sshll.u32 %s2019_s22, 4  ;;  %s441_s24 = sshll.u32 %s2550_s9, 4  ;;  %s421_s27 = int_to_ptr.vmem [resolvable:$true] %s420_s27  ;;  %s442_s24 = int_to_ptr.hbm [resolvable:$true] %s441_s24 }
  0x19   : > { %p1753_p13 = pnand %p2172_p11, %p1752_p12  ;;  %s2020_s30 = smov 64  }
  0x1a   : > { %s2021_s23 = smov 4   ;;  %s2022_s14 = smov [#allocation7]  }
  0x1b   : > { %1755 = dma.hbm_to_vmem [thread:$0]  (!%p1753_p13), %s419_s29, 256, %s421_s27, [#allocation5], %s2020_s30, %s2020_s30, %s2021_s23  }
  0x1c   : > { %s443_s26 = sshll.u32 %s2022_s14, 4  ;;  %481 = sbr.rel (%p2168_p10) target bundleno = 1969 (0x7b1), region = 80  ;;  %s444_s26 = int_to_ptr.vmem [resolvable:$true] %s443_s26 }
  0x1d   : > { %1758 = dma.hbm_to_vmem [thread:$0]  (!%p1753_p13), %s442_s24, 256, %s444_s26, [#allocation8], %s2020_s30, %s2020_s30, %s2021_s23  }
  0x21   : > { %1984 = dma.done.wait (%p2172_p11), [#allocation5], 256  }
  0x22   : > { %1986 = vsyncadd (%p2172_p11), [#allocation5], 4294967040 }
  0x23   : > { %1988 = dma.done.wait (%p2172_p11), [#allocation8], 256  }
  0x24   : > { %1990 = vsyncadd (%p2172_p11), [#allocation8], 4294967040  ;;  %p534_p0 = scmp.lt.s32.totalorder %s2009_s21, 1  ;;  %v1731_v0 = vld [vmem:[%s2544_s3 + $0x8] sm:$0xff]  ;;  %v1730_v2 = vld [vmem:[%s2544_s3] sm:$0xff]  ;;  %vm565_vm0 = vcmask 261120  }
  0x25   : > { %v1733_v1 = vld [vmem:[%s2542_s1 + $0x8] sm:$0xff]  ;;  %v1732_v3 = vld [vmem:[%s2542_s1] sm:$0xff]  ;;  %575 = vmatpush.bf16.msra.mxu0 %v1731_v0  ;;  %s2024_s16 = smov 104   ;;  %s2025_s17 = smov 120   ;;  %v2026_v15 = vmov 1983009808  }
  0x26   : > { %s535_s14 = scalar_select %p534_p0, %s2009_s21, 1  ;;  %874 = vmatpush.bf16.msra.mxu1 %v1733_v1  ;;  %v1840_v6 = vld [vmem:[%s2545_s4] ss:$0 sm:$0xff]  ;;  %v598_v16 = vunpack.c.l.s4 %v2026_v15  ;;  %vm593_vm1 = vcmask 1047556   ;;  %v2027_v27 = vmov 1934713408  }
  0x27   : > { %v1841_v7 = vld [vmem:[%s2543_s2] ss:$0 sm:$0xff]  ;;  %v622_v28 = vunpack.c.l.s4 %v2027_v27  ;;  %vm707_vm2 = vcmask 60416   ;;  %vm1010_vm3 = vcmask 64512   ;;  %s2028_s25 = smov 96   ;;  %vm1142_vm4 = vcmask 1043456  }
  0x28   : > { %s1664_s20 = sshll.u32 %s535_s14, 3  ;;  %v2235_v22 = vunpack.c.0.s8 %v598_v16  ;;  %s2029_s29 = smov 16   ;;  %vm1339_vm5 = vcmask 130048   ;;  %vm1341_vm6 = vcmask 195584   ;;  %vm1495_vm11 = vcmask 523264  }
  0x29   : > { %s537_s30 = scalar_lea.vmem %s2541_s0, %s1664_s20  ;;  %576 = vmatpush.bf16.msra.mxu0 %v1730_v2  ;;  %v2248_v37 = vunpack.c.0.s8 %v622_v28  ;;  %s2030_s27 = smov 8  }
  0x2a   : > { %v2213_v4 = vld [vmem:[%s537_s30] sm:$0xff]  ;;  %875 = vmatpush.bf16.msra.mxu1 %v1732_v3  ;;  %s2023_s30 = smov 112   ;;  %s2031_s18 = smov 24  }
  0x2b   : > { %v544_v5 = vpack.c.bf16 %v2213_v4, %v2213_v4  ;;  %s531_s23 = sand.u32 1, %s2001_s19   ;;  %s2576_s14 = sld [smem:[#allocation20_spill]] }
  0x2d   : > { %1673 = vmatmul.msk.bf16.vlgmr.msra.gmra.mxu0 %vm565_vm0, %v544_v5  ;;  %1682 = vmatmul.msk.bf16.vlgmr.msra.gmra.mxu1 %vm565_vm0, %v544_v5 }
  0xaa   : > { %v578_v8 = vpop.f32.mrf.mxu0  ;;  %v877_v9 = vpop.f32.mrf.mxu1 }
  0xab   : > { %v2225_v10 = vadd.f32 %v1840_v6, %v578_v8  ;;  %v878_v11 = vadd.f32 %v1841_v7, %v877_v9 }
  0xad   : > { %885 = vrot.lane.b32.xlu2 %v878_v11, %s2023_s30  ;;  %589 = vrot.lane.b32.xlu1 %v2225_v10, %s2024_s16  ;;  %v894_v20 = vrot.slane %v878_v11, 4  ;;  %v595_v35 = vrot.slane %v2225_v10, 4 }
  0xae   : > { %583 = vrot.lane.b32.xlu0 %v2225_v10, %s2025_s17 }
  0xb2   : > { %v580_v12 = vpop.f32.mrf.mxu0  ;;  %v879_v13 = vpop.f32.mrf.mxu1 }
  0xb5   : > { %882 = vrot.lane.b32.xlu1 %v878_v11, %s2025_s17  ;;  %888 = vrot.lane.b32.xlu2 %v878_v11, %s2024_s16  ;;  %s1727_s16 = sshll.u32 %s2009_s21, 3  ;;  %s1548_s17 = scalar_lea.sflag [#allocation6], %s531_s23 }
  0xb6   : > { %586 = vrot.lane.b32.xlu0 %v2225_v10, %s2023_s30  ;;  %s1663_s30 = sshll.u32 %s531_s23, 3 }
  0xb7   : > { %s533_s20 = scalar_lea.vmem [#allocation9], %s1663_s30  ;;  %s1951_s30 = scalar_lea.hbm %s2556_s15, 16 }
  0xb8   : > { %s1561_s21 = sshll.u32 %s533_s20, 4  ;;  %s1562_s21 = int_to_ptr.vmem [resolvable:$true] %s1561_s21 }
 0x107   : > { %v886_v14 = vpop.permute.xlu2 %885 }
 0x108   : > { %v891_v17 = vrot.slane %v886_v14, 4  ;;  %v895_v24 = vsel %vm593_vm1, %v886_v14, %v894_v20 }
 0x109   : > { %v903_v31 = vperm.slane %v895_v24, %v2235_v22 }
 0x10a   : > { %v893_v23 = vsel %vm593_vm1, %v891_v17, %v878_v11 }
 0x10b   : > { %v899_v29 = vperm.slane %v893_v23, %v2235_v22  ;;  %v930_v45 = vrot.slane %v903_v31, 4 }
 0x10d   : > { %v918_v41 = vrot.slane %v899_v29, 4 }
 0x10f   : > { %v889_v25 = vpop.permute.xlu2 %888 }
 0x110   : > { %v904_v32 = vrot.slane %v889_v25, 4 }
 0x11f   : > { %v2230_v18 = vpop.permute.xlu1 %589 }
 0x120   : > { %v2232_v19 = vpop.permute.xlu0 %583  ;;  %v605_v21 = vrot.slane %v2230_v18, 4 }
 0x121   : > { %v607_v26 = vrot.slane %v2232_v19, 4 }
 0x122   : > { %v606_v30 = vsel %vm593_vm1, %v605_v21, %v2232_v19 }
 0x123   : > { %v608_v33 = vsel %vm593_vm1, %v2230_v18, %v607_v26  ;;  %v612_v36 = vperm.slane %v606_v30, %v2235_v22 }
 0x124   : > { %v616_v46 = vperm.slane %v608_v33, %v2235_v22 }
 0x125   : > { %v617_v53 = vrot.slane %v612_v36, 4 }
 0x126   : > { %v629_v59 = vrot.slane %v616_v46, 4 }
 0x127   : > { %v883_v34 = vpop.permute.xlu1 %882 }
 0x128   : > { %v905_v38 = vsel %vm593_vm1, %v904_v32, %v883_v34  ;;  %v906_v39 = vrot.slane %v883_v34, 4  ;;  %v2251_v40 = vpop.permute.xlu0 %586 }
 0x129   : > { %v911_v42 = vperm.slane %v905_v38, %v2235_v22  ;;  %v592_v43 = vrot.slane %v2251_v40, 4  ;;  %v596_v44 = vsel %vm593_vm1, %v2251_v40, %v595_v35 }
 0x12a   : > { %v907_v47 = vsel %vm593_vm1, %v889_v25, %v906_v39  ;;  %v604_v48 = vperm.slane %v596_v44, %v2235_v22 }
 0x12b   : > { %v915_v49 = vperm.slane %v907_v47, %v2235_v22  ;;  %v916_v50 = vrot.slane %v911_v42, 4  ;;  %v919_v51 = vsel %vm593_vm1, %v911_v42, %v918_v41  ;;  %v594_v52 = vsel %vm593_vm1, %v592_v43, %v2225_v10 }
 0x12c   : > { %v600_v54 = vperm.slane %v594_v52, %v2235_v22  ;;  %v927_v56 = vperm.slane %v919_v51, %v2248_v37  ;;  %v631_v62 = vrot.slane %v604_v48, 4  ;;  %v630_v2 = vsel %vm593_vm1, %v629_v59, %v604_v48 }
 0x12d   : > { %v917_v55 = vsel %vm593_vm1, %v916_v50, %v899_v29  ;;  %v928_v57 = vrot.slane %v915_v49, 4  ;;  %v931_v58 = vsel %vm593_vm1, %v915_v49, %v930_v45  ;;  %v636_v12 = vperm.slane %v630_v2, %v2248_v37 }
 0x12e   : > { %v939_v60 = vperm.slane %v931_v58, %v2248_v37  ;;  %v618_v61 = vsel %vm593_vm1, %v617_v53, %v600_v54  ;;  %v619_v0 = vrot.slane %v600_v54, 4  ;;  %v923_v1 = vperm.slane %v917_v55, %v2248_v37 }
 0x12f   : > { %v929_v63 = vsel %vm593_vm1, %v928_v57, %v903_v31  ;;  %v942_v3 = vrot.slane %v927_v56, 4  ;;  %v624_v6 = vperm.slane %v618_v61, %v2248_v37  ;;  %v632_v9 = vsel %vm593_vm1, %v616_v46, %v631_v62 }
 0x130   : > { %v620_v5 = vsel %vm593_vm1, %v612_v36, %v619_v0  ;;  %v935_v7 = vperm.slane %v929_v63, %v2248_v37  ;;  %v946_v8 = vrot.slane %v939_v60, 4  ;;  %v940_v13 = vrot.slane %v923_v1, 4 }
 0x131   : > { %v628_v11 = vperm.slane %v620_v5, %v2248_v37  ;;  %v943_v14 = vsel %vm593_vm1, 0.0, %v942_v3  ;;  %v641_v15 = vrot.slane %v624_v6, 4  ;;  %v640_v17 = vperm.slane %v632_v9, %v2248_v37 }
 0x132   : > { %v944_v20 = vrot.slane %v935_v7, 4  ;;  %v947_v21 = vsel %vm593_vm1, 0.0, %v946_v8  ;;  %v948_v23 = vsel %vm593_vm1, %v942_v3, %v923_v1  ;;  %v645_v26 = vrot.slane %v636_v12, 4 }
 0x133   : > { %v643_v16 = vrot.slane %v628_v11, 4  ;;  %v647_v27 = vrot.slane %v640_v17, 4  ;;  %v941_v28 = vsel %vm593_vm1, 0.0, %v940_v13  ;;  %v953_v29 = vrot.slane %v943_v14, 4 }
 0x134   : > { %v964_v32 = vrot.slane %v947_v21, 4  ;;  %v642_v33 = vsel %vm593_vm1, 0.0, %v641_v15  ;;  %v945_v42 = vsel %vm593_vm1, 0.0, %v944_v20  ;;  %v646_v44 = vsel %vm593_vm1, 0.0, %v645_v26 }
 0x135   : > { %v644_v24 = vsel %vm593_vm1, 0.0, %v643_v16  ;;  %v649_v25 = vsel %vm593_vm1, %v643_v16, %v624_v6  ;;  %v648_v34 = vsel %vm593_vm1, 0.0, %v647_v27  ;;  %v660_v35 = vsel %vm593_vm1, %v647_v27, %v636_v12 }
 0x136   : > { %v653_v30 = vperm.slane %v649_v25, %v2235_v22  ;;  %v654_v31 = vrot.slane %v644_v24, 4  ;;  %v664_v39 = vperm.slane %v660_v35, %v2235_v22  ;;  %v665_v41 = vrot.slane %v648_v34, 4 }
 0x137   : > { %v952_v45 = vperm.slane %v948_v23, %v2235_v22  ;;  %v954_v46 = vsel %vm593_vm1, %v953_v29, %v941_v28  ;;  %v959_v49 = vsel %vm593_vm1, %v946_v8, %v935_v7  ;;  %v965_v53 = vsel %vm593_vm1, %v964_v32, %v945_v42 }
 0x138   : > { %v655_v36 = vsel %vm593_vm1, %v654_v31, %v642_v33  ;;  %v673_v38 = vrot.slane %v653_v30, 4  ;;  %v666_v47 = vsel %vm593_vm1, %v665_v41, %v646_v44  ;;  %v685_v48 = vrot.slane %v664_v39, 4 }
 0x139   : > { %v659_v43 = vperm.slane %v655_v36, %v2235_v22  ;;  %v670_v52 = vperm.slane %v666_v47, %v2235_v22  ;;  %v958_v55 = vperm.slane %v954_v46, %v2235_v22  ;;  %v963_v59 = vperm.slane %v959_v49, %v2235_v22 }
 0x13a   : > { %v972_v63 = vrot.slane %v952_v45, 4  ;;  %v969_v1 = vperm.slane %v965_v53, %v2235_v22 }
 0x13b   : > { %v671_v50 = vrot.slane %v659_v43, 4  ;;  %v674_v51 = vsel %vm593_vm1, %v659_v43, %v673_v38  ;;  %v683_v57 = vrot.slane %v670_v52, 4  ;;  %v686_v58 = vsel %vm593_vm1, %v670_v52, %v685_v48 }
 0x13c   : > { %v682_v54 = vperm.slane %v674_v51, %v2248_v37  ;;  %v694_v62 = vperm.slane %v686_v58, %v2248_v37  ;;  %v970_v8 = vrot.slane %v958_v55, 4  ;;  %v984_v13 = vrot.slane %v963_v59, 4 }
 0x13d   : > { %v672_v56 = vsel %vm593_vm1, %v671_v50, %v653_v30  ;;  %v684_v0 = vsel %vm593_vm1, %v683_v57, %v664_v39  ;;  %v973_v16 = vsel %vm593_vm1, %v958_v55, %v972_v63  ;;  %v982_v17 = vrot.slane %v969_v1, 4 }
 0x13e   : > { %v678_v60 = vperm.slane %v672_v56, %v2248_v37  ;;  %v701_v61 = vrot.slane %v682_v54, 4  ;;  %v690_v3 = vperm.slane %v684_v0, %v2248_v37  ;;  %v699_v5 = vrot.slane %v694_v62, 4 }
 0x13f   : > { %v971_v23 = vsel %vm593_vm1, %v970_v8, %v952_v45  ;;  %v981_v24 = vperm.slane %v973_v16, %v2248_v37  ;;  %v985_v25 = vsel %vm593_vm1, %v969_v1, %v984_v13  ;;  %v983_v26 = vsel %vm593_vm1, %v982_v17, %v963_v59 }
 0x140   : > { %v697_v2 = vrot.slane %v678_v60, 4  ;;  %v702_v6 = vsel %vm593_vm1, %v694_v62, %v701_v61  ;;  %v695_v9 = vrot.slane %v690_v3, 4  ;;  %v700_v12 = vsel %vm593_vm1, %v699_v5, %v682_v54 }
 0x141   : > { %v706_v7 = vpack.c.bf16 %v702_v6, %v702_v6  ;;  %v705_v15 = vpack.c.bf16 %v700_v12, %v700_v12  ;;  %v977_v27 = vperm.slane %v971_v23, %v2248_v37  ;;  %v993_v28 = vperm.slane %v985_v25, %v2248_v37 }
 0x142   : > { %v698_v11 = vsel %vm593_vm1, %v690_v3, %v697_v2  ;;  %v696_v20 = vsel %vm593_vm1, %v695_v9, %v678_v60  ;;  %v989_v30 = vperm.slane %v983_v26, %v2248_v37  ;;  %v1000_v31 = vrot.slane %v981_v24, 4 }
 0x143   : > { %v704_v14 = vpack.c.bf16 %v698_v11, %v698_v11  ;;  %711 = vst.msk [vmem:[#allocation2 + $0xc] sm:$0xf] %vm707_vm2, %v706_v7  ;;  %v703_v21 = vpack.c.bf16 %v696_v20, %v696_v20  ;;  %v996_v34 = vrot.slane %v977_v27, 4  ;;  %v998_v38 = vrot.slane %v993_v28, 4 }
 0x144   : > { %710 = vst.msk [vmem:[#allocation2 + $0x8] sm:$0xf] %vm707_vm2, %v705_v15  ;;  %v994_v42 = vrot.slane %v989_v30, 4  ;;  %v1001_v43 = vsel %vm593_vm1, %v993_v28, %v1000_v31  ;;  %v1830_v0 = vpack.i.bf16 %v2232_v19, %v2225_v10  ;;  %v1835_v1 = vpack.i.bf16 %v2230_v18, %v2251_v40 }
 0x145   : > { %709 = vst.msk [vmem:[#allocation2 + $0x4] sm:$0xf] %vm707_vm2, %v704_v14  ;;  %v997_v45 = vsel %vm593_vm1, %v989_v30, %v996_v34  ;;  %v999_v46 = vsel %vm593_vm1, %v998_v38, %v981_v24  ;;  %v1005_v47 = vpack.c.bf16 %v1001_v43, %v1001_v43 }
 0x146   : > { %708 = vst.msk [vmem:[#allocation2] sm:$0xf] %vm707_vm2, %v703_v21  ;;  %v995_v48 = vsel %vm593_vm1, %v994_v42, %v977_v27  ;;  %v1003_v49 = vpack.c.bf16 %v997_v45, %v997_v45  ;;  %v1004_v50 = vpack.c.bf16 %v999_v46, %v999_v46 }
 0x147   : > { %v1002_v51 = vpack.c.bf16 %v995_v48, %v995_v48 }
 0x14a   : > { %v1009_v29 = vld [vmem:[#allocation2 + $0xc] sm:$0xf] }
 0x14b   : > { %v1072_v32 = vsel %vm1010_vm3, %v1009_v29, 0  ;;  %v1008_v35 = vld [vmem:[#allocation2 + $0x8] sm:$0xf] }
 0x14c   : > { %1081 = vmatpush.bf16.xpose.msrb.mxu1 %v1072_v32  ;;  %v1007_v33 = vld [vmem:[#allocation2 + $0x4] sm:$0xf]  ;;  %v1053_v39 = vsel %vm1010_vm3, %v1008_v35, 0 }
 0x14d   : > { %v1034_v36 = vsel %vm1010_vm3, %v1007_v33, 0  ;;  %v1006_v41 = vld [vmem:[#allocation2] sm:$0xf]  ;;  %1062 = vmatpush.bf16.xpose.msrb.mxu0 %v1053_v39 }
 0x14e   : > { %1043 = vmatpush.bf16.xpose.msra.mxu3 %v1034_v36  ;;  %v1015_v44 = vsel %vm1010_vm3, %v1006_v41, 0 }
 0x14f   : > { %1024 = vmatpush.bf16.xpose.msra.mxu2 %v1015_v44 }
 0x153   : > { %1686 = vmatmul.msk.bf16.vlgmr.msrb.gmra.mxu1 %vm1010_vm3, %v1005_v47 }
 0x154   : > { %1685 = vmatmul.msk.bf16.vlgmr.msrb.gmra.mxu0 %vm1010_vm3, %v1004_v50 }
 0x155   : > { %1684 = vmatmul.msk.bf16.vlgmr.msra.gmra.mxu3 %vm1010_vm3, %v1003_v49 }
 0x156   : > { %1683 = vmatmul.msk.bf16.vlgmr.msra.gmra.mxu2 %vm1010_vm3, %v1002_v51 }
 0x1d0   : > { %v1083_v52 = vpop.f32.mrf.mxu1 }
 0x1d1   : > { %v1064_v53 = vpop.f32.mrf.mxu0  ;;  %v1096_v61 = vsel %vm1010_vm3, %v1083_v52, -inf }
 0x1d2   : > { %v1093_v54 = vsel %vm1010_vm3, %v1064_v53, -inf }
 0x1d3   : > { %1094 = vmax.xlane.f32.xlu2 %v1093_v54 }
 0x1d8   : > { %v1085_v55 = vpop.f32.mrf.mxu1  ;;  %v1045_v56 = vpop.f32.mrf.mxu3 }
 0x1d9   : > { %v1090_v57 = vsel %vm1010_vm3, %v1045_v56, -inf  ;;  %v1026_v58 = vpop.f32.mrf.mxu2  ;;  %v1066_v59 = vpop.f32.mrf.mxu0 }
 0x1da   : > { %1091 = vmax.xlane.f32.xlu1 %v1090_v57  ;;  %v1087_v60 = vsel %vm1010_vm3, %v1026_v58, -inf }
 0x1db   : > { %1088 = vmax.xlane.f32.xlu0 %v1087_v60  ;;  %1097 = vmax.xlane.f32.xlu2 %v1096_v61 }
 0x1e0   : > { %v1047_v62 = vpop.f32.mrf.mxu3 }
 0x1e1   : > { %v1028_v63 = vpop.f32.mrf.mxu2 }
 0x1ef   : > { %1831 = vrot.lane.b32.xlu0 %v1830_v0, %s2028_s25 }
 0x1f3   : > { %1836 = vrot.lane.b32.xlu1 %v1835_v1, %s2028_s25 }
 0x246   : > { %v1095_v2 = vpop.xlane.xlu2 %1094 }
 0x247   : > { %v1101_v3 = vsub.f32 %v1064_v53, %v1095_v2 }
 0x249   : > { %v1107_v5 = vmul.f32 1.442695, %v1101_v3 }
 0x24b   : > { %1849 = vpow2.f32 %v1107_v5 }
 0x24d   : > { %v1092_v7 = vpop.xlane.xlu1 %1091 }
 0x24e   : > { %v1089_v6 = vpop.xlane.xlu0 %1088  ;;  %v1100_v11 = vsub.f32 %v1045_v56, %v1092_v7  ;;  %v1098_v19 = vpop.xlane.xlu2 %1097 }
 0x24f   : > { %v1099_v8 = vsub.f32 %v1026_v58, %v1089_v6  ;;  %v1102_v18 = vsub.f32 %v1083_v52, %v1098_v19 }
 0x250   : > { %v1105_v13 = vmul.f32 1.442695, %v1100_v11 }
 0x251   : > { %v1103_v9 = vmul.f32 1.442695, %v1099_v8  ;;  %v2348_v12 = vpop.eup %1849  ;;  %v1109_v15 = vmul.f32 1.442695, %v1102_v18 }
 0x252   : > { %v1117_v10 = vsel %vm1010_vm3, %v2348_v12, 0.0 }
 0x253   : > { %1851 = vpow2.f32 %v1103_v9  ;;  %1118 = vadd.xlane.f32.xlu0 %v1117_v10 }
 0x254   : > { %1853 = vpow2.f32 %v1105_v13 }
 0x255   : > { %1855 = vpow2.f32 %v1109_v15 }
 0x259   : > { %v2352_v40 = vpop.eup %1851 }
 0x25a   : > { %v1111_v14 = vsel %vm1010_vm3, %v2352_v40, 0.0  ;;  %v2356_v16 = vpop.eup %1853 }
 0x25b   : > { %1112 = vadd.xlane.f32.xlu2 %v1111_v14  ;;  %v1114_v23 = vsel %vm1010_vm3, %v2356_v16, 0.0  ;;  %v2360_v29 = vpop.eup %1855 }
 0x25c   : > { %v1120_v39 = vsel %vm1010_vm3, %v2360_v29, 0.0 }
 0x261   : > { %v1832_v17 = vpop.permute.xlu0 %1831 }
 0x262   : > { %v1834_v20 = vunpack.i.h.bf16 %v1832_v17  ;;  %v1833_v21 = vunpack.i.l.bf16 %v1832_v17 }
 0x263   : > { %1115 = vadd.xlane.f32.xlu2 %v1114_v23 }
 0x264   : > { %v738_v25 = vrot.slane %v1834_v20, 4  ;;  %v726_v26 = vrot.slane %v1833_v21, 4 }
 0x265   : > { %v1837_v24 = vpop.permute.xlu1 %1836 }
 0x266   : > { %v1839_v27 = vunpack.i.h.bf16 %v1837_v24  ;;  %v1838_v28 = vunpack.i.l.bf16 %v1837_v24 }
 0x268   : > { %v736_v30 = vrot.slane %v1839_v27, 4  ;;  %v724_v31 = vrot.slane %v1838_v28, 4  ;;  %v727_v32 = vsel %vm593_vm1, %v1838_v28, %v726_v26  ;;  %v739_v33 = vsel %vm593_vm1, %v1839_v27, %v738_v25 }
 0x269   : > { %v735_v34 = vperm.slane %v727_v32, %v2235_v22  ;;  %v747_v35 = vperm.slane %v739_v33, %v2235_v22 }
 0x26a   : > { %v725_v36 = vsel %vm593_vm1, %v724_v31, %v1833_v21  ;;  %v737_v38 = vsel %vm593_vm1, %v736_v30, %v1834_v20 }
 0x26b   : > { %v731_v41 = vperm.slane %v725_v36, %v2235_v22  ;;  %v743_v42 = vperm.slane %v737_v38, %v2235_v22  ;;  %v760_v43 = vrot.slane %v747_v35, 4  ;;  %v762_v44 = vrot.slane %v735_v34, 4  ;;  %1121 = vadd.xlane.f32.xlu2 %v1120_v39 }
 0x26d   : > { %v748_v45 = vrot.slane %v743_v42, 4  ;;  %v750_v46 = vrot.slane %v731_v41, 4  ;;  %v761_v47 = vsel %vm593_vm1, %v760_v43, %v735_v34  ;;  %v763_v48 = vsel %vm593_vm1, %v747_v35, %v762_v44 }
 0x26e   : > { %v767_v49 = vperm.slane %v761_v47, %v2248_v37  ;;  %v771_v50 = vperm.slane %v763_v48, %v2248_v37 }
 0x26f   : > { %v749_v51 = vsel %vm593_vm1, %v748_v45, %v731_v41  ;;  %v751_v52 = vsel %vm593_vm1, %v743_v42, %v750_v46 }
 0x270   : > { %v755_v53 = vperm.slane %v749_v51, %v2248_v37  ;;  %v759_v54 = vperm.slane %v751_v52, %v2248_v37  ;;  %v776_v55 = vrot.slane %v767_v49, 4  ;;  %v778_v56 = vrot.slane %v771_v50, 4 }
 0x272   : > { %v772_v57 = vrot.slane %v755_v53, 4  ;;  %v774_v58 = vrot.slane %v759_v54, 4  ;;  %v779_v59 = vsel %vm593_vm1, 0.0, %v778_v56  ;;  %v791_v60 = vsel %vm593_vm1, %v778_v56, %v767_v49 }
 0x273   : > { %v796_v61 = vrot.slane %v779_v59, 4  ;;  %v777_v63 = vsel %vm593_vm1, 0.0, %v776_v55  ;;  %v795_v1 = vperm.slane %v791_v60, %v2235_v22 }
 0x274   : > { %v775_v62 = vsel %vm593_vm1, 0.0, %v774_v58  ;;  %v780_v0 = vsel %vm593_vm1, %v774_v58, %v755_v53  ;;  %v773_v6 = vsel %vm593_vm1, 0.0, %v772_v57 }
 0x275   : > { %v784_v2 = vperm.slane %v780_v0, %v2235_v22  ;;  %v785_v3 = vrot.slane %v775_v62, 4  ;;  %v797_v5 = vsel %vm593_vm1, %v796_v61, %v777_v63  ;;  %v816_v8 = vrot.slane %v795_v1, 4 }
 0x276   : > { %v801_v7 = vperm.slane %v797_v5, %v2235_v22 }
 0x277   : > { %v786_v9 = vsel %vm593_vm1, %v785_v3, %v773_v6  ;;  %v804_v11 = vrot.slane %v784_v2, 4 }
 0x278   : > { %v790_v10 = vperm.slane %v786_v9, %v2235_v22  ;;  %v814_v19 = vrot.slane %v801_v7, 4  ;;  %v817_v13 = vsel %vm593_vm1, %v801_v7, %v816_v8 }
 0x279   : > { %v825_v18 = vperm.slane %v817_v13, %v2248_v37 }
 0x27a   : > { %v802_v14 = vrot.slane %v790_v10, 4  ;;  %v805_v15 = vsel %vm593_vm1, %v790_v10, %v804_v11  ;;  %v815_v17 = vsel %vm593_vm1, %v814_v19, %v795_v1 }
 0x27b   : > { %v813_v20 = vperm.slane %v805_v15, %v2248_v37  ;;  %v821_v21 = vperm.slane %v815_v17, %v2248_v37  ;;  %v830_v23 = vrot.slane %v825_v18, 4 }
 0x27c   : > { %v803_v24 = vsel %vm593_vm1, %v802_v14, %v784_v2 }
 0x27d   : > { %v809_v25 = vperm.slane %v803_v24, %v2248_v37  ;;  %v826_v26 = vrot.slane %v821_v21, 4  ;;  %v831_v27 = vsel %vm593_vm1, %v830_v23, %v813_v20  ;;  %v832_v28 = vrot.slane %v813_v20, 4 }
 0x27e   : > { %v836_v30 = vpack.c.bf16 %v831_v27, %v831_v27 }
 0x27f   : > { %v827_v31 = vsel %vm593_vm1, %v826_v26, %v809_v25  ;;  %v828_v32 = vrot.slane %v809_v25, 4  ;;  %v833_v33 = vsel %vm593_vm1, %v825_v18, %v832_v28 }
 0x280   : > { %v834_v34 = vpack.c.bf16 %v827_v31, %v827_v31  ;;  %v837_v35 = vpack.c.bf16 %v833_v33, %v833_v33  ;;  %840 = vst.msk [vmem:[#allocation3 + $0x8] sm:$0xf] %vm707_vm2, %v836_v30 }
 0x281   : > { %v829_v36 = vsel %vm593_vm1, %v821_v21, %v828_v32 }
 0x282   : > { %v835_v38 = vpack.c.bf16 %v829_v36, %v829_v36  ;;  %841 = vst.msk [vmem:[#allocation3 + $0xc] sm:$0xf] %vm707_vm2, %v837_v35 }
 0x283   : > { %838 = vst.msk [vmem:[#allocation3] sm:$0xf] %vm707_vm2, %v834_v34 }
 0x284   : > { %839 = vst.msk [vmem:[#allocation3 + $0x4] sm:$0xf] %vm707_vm2, %v835_v38 }
 0x287   : > { %v1137_v39 = vld [vmem:[#allocation3 + $0x8] sm:$0xf] }
 0x288   : > { %v1182_v41 = vsel %vm1142_vm4, %v1137_v39, 0 }
 0x289   : > { %1191 = vmatpush.bf16.msra.mxu0 %v1182_v41  ;;  %v1138_v42 = vld [vmem:[#allocation3 + $0xc] sm:$0xf] }
 0x28a   : > { %v1135_v43 = vld [vmem:[#allocation3] sm:$0xf]  ;;  %v1201_v44 = vsel %vm1142_vm4, %v1138_v42, 0 }
 0x28b   : > { %v1144_v45 = vsel %vm1142_vm4, %v1135_v43, 0  ;;  %1210 = vmatpush.bf16.msra.mxu1 %v1201_v44  ;;  %v1136_v46 = vld [vmem:[#allocation3 + $0x4] sm:$0xf] }
 0x28c   : > { %1153 = vmatpush.bf16.msrb.mxu2 %v1144_v45  ;;  %v1163_v47 = vsel %vm1142_vm4, %v1136_v46, 0 }
 0x28d   : > { %1172 = vmatpush.bf16.msrb.mxu3 %v1163_v47 }
 0x2c6   : > { %v1119_v48 = vpop.xlane.xlu0 %1118 }
 0x2c7   : > { %1857 = vrcp.f32 %v1119_v48 }
 0x2cd   : > { %v1858_v49 = vpop.eup %1857 }
 0x2ce   : > { %v1113_v50 = vpop.xlane.xlu2 %1112  ;;  %v1129_v51 = vmul.f32 %v1858_v49, %v2348_v12 }
 0x2cf   : > { %1859 = vrcp.f32 %v1113_v50 }
 0x2d0   : > { %v1133_v52 = vpack.c.bf16 %v1129_v51, %v1129_v51 }
 0x2d2   : > { %1689 = vmatmul.msk.bf16.vlgmr.msra.gmra.mxu0 %vm1010_vm3, %v1133_v52 }
 0x2d5   : > { %v1860_v53 = vpop.eup %1859 }
 0x2d6   : > { %v1127_v54 = vmul.f32 %v1860_v53, %v2352_v40  ;;  %v1116_v55 = vpop.xlane.xlu2 %1115 }
 0x2d7   : > { %1861 = vrcp.f32 %v1116_v55 }
 0x2d8   : > { %v1131_v56 = vpack.c.bf16 %v1127_v54, %v1127_v54 }
 0x2da   : > { %1687 = vmatmul.msk.bf16.vlgmr.msrb.gmra.mxu2 %vm1010_vm3, %v1131_v56 }
 0x2dd   : > { %v1862_v57 = vpop.eup %1861 }
 0x2de   : > { %v1128_v58 = vmul.f32 %v1862_v57, %v2356_v16  ;;  %v1122_v59 = vpop.xlane.xlu2 %1121 }
 0x2df   : > { %1863 = vrcp.f32 %v1122_v59 }
 0x2e0   : > { %v1132_v60 = vpack.c.bf16 %v1128_v58, %v1128_v58 }
 0x2e2   : > { %1688 = vmatmul.msk.bf16.vlgmr.msrb.gmra.mxu3 %vm1010_vm3, %v1132_v60 }
 0x2e5   : > { %v1864_v12 = vpop.eup %1863 }
 0x2e6   : > { %v1130_v61 = vmul.f32 %v1864_v12, %v2360_v29 }
 0x2e8   : > { %v1134_v62 = vpack.c.bf16 %v1130_v61, %v1130_v61 }
 0x2ea   : > { %1690 = vmatmul.msk.bf16.vlgmr.msra.gmra.mxu1 %vm1010_vm3, %v1134_v62 }
 0x34f   : > { %v1193_v40 = vpop.f32.mrf.mxu0 }
 0x350   : > { %v1216_v2 = vrot.slane %v1193_v40, 4 }
 0x357   : > { %v1195_v63 = vpop.f32.mrf.mxu0 }
 0x35d   : > { %v1155_v0 = vpop.f32.mrf.mxu2 }
 0x35e   : > { %v1218_v1 = vrot.slane %v1155_v0, 4  ;;  %v1217_v16 = vsel %vm593_vm1, %v1216_v2, %v1155_v0 }
 0x35f   : > { %v1223_v9 = vperm.slane %v1217_v16, %v2235_v22 }
 0x360   : > { %v1219_v3 = vsel %vm593_vm1, %v1193_v40, %v1218_v1 }
 0x361   : > { %v1227_v5 = vperm.slane %v1219_v3, %v2235_v22  ;;  %v1242_v14 = vrot.slane %v1223_v9, 4 }
 0x363   : > { %v1254_v19 = vrot.slane %v1227_v5, 4 }
 0x365   : > { %v1157_v6 = vpop.f32.mrf.mxu2  ;;  %v1174_v7 = vpop.f32.mrf.mxu3 }
 0x366   : > { %v1230_v8 = vrot.slane %v1174_v7, 4  ;;  %v1735_v6 = vld [vmem:[#allocation4 + $0x8] sm:$0xff] }
 0x367   : > { %v1212_v29 = vpop.f32.mrf.mxu1  ;;  %1373 = vmatpush.bf16.msra.mxu2 %v1735_v6 }
 0x368   : > { %v1228_v11 = vrot.slane %v1212_v29, 4  ;;  %v1231_v10 = vsel %vm593_vm1, %v1212_v29, %v1230_v8 }
 0x369   : > { %v1239_v13 = vperm.slane %v1231_v10, %v2235_v22 }
 0x36a   : > { %v1229_v18 = vsel %vm593_vm1, %v1228_v11, %v1174_v7  ;;  %v1734_v7 = vld [vmem:[#allocation4] sm:$0xff] }
 0x36b   : > { %v1235_v15 = vperm.slane %v1229_v18, %v2235_v22  ;;  %v1252_v17 = vrot.slane %v1239_v13, 4  ;;  %v1255_v20 = vsel %vm593_vm1, %v1239_v13, %v1254_v19  ;;  %1374 = vmatpush.bf16.msra.mxu2 %v1734_v7  ;;  %v1842_v13 = vld [vmem:[%s2547_s6] ss:$0 sm:$0xff] }
 0x36c   : > { %v1263_v21 = vperm.slane %v1255_v20, %v2248_v37 }
 0x36d   : > { %v1240_v23 = vrot.slane %v1235_v15, 4  ;;  %v1243_v24 = vsel %vm593_vm1, %v1235_v15, %v1242_v14  ;;  %v1253_v25 = vsel %vm593_vm1, %v1252_v17, %v1227_v5  ;;  %v1176_v26 = vpop.f32.mrf.mxu3 }
 0x36e   : > { %v1251_v27 = vperm.slane %v1243_v24, %v2248_v37  ;;  %v1259_v28 = vperm.slane %v1253_v25, %v2248_v37  ;;  %v1270_v30 = vrot.slane %v1263_v21, 4  ;;  %v2032_v21 = vmov 32.0  }
 0x36f   : > { %v1241_v31 = vsel %vm593_vm1, %v1240_v23, %v1223_v9  ;;  %v1214_v32 = vpop.f32.mrf.mxu1  ;;  %1865 = vrcp.f32 %v2032_v21  ;;  %v1848_v21 = vld [vmem:[%s2576_s14] ss:$0 sm:$0xff] }
 0x370   : > { %v1247_v33 = vperm.slane %v1241_v31, %v2248_v37  ;;  %v1266_v34 = vrot.slane %v1251_v27, 4  ;;  %v1268_v35 = vrot.slane %v1259_v28, 4  ;;  %v1271_v36 = vsel %vm593_vm1, 0.0, %v1270_v30 }
 0x371   : > { %v1283_v38 = vsel %vm593_vm1, %v1270_v30, %v1259_v28  ;;  %v1288_v39 = vrot.slane %v1271_v36, 4  ;;  %v1741_v36 = vld [vmem:[%s2552_s11 + $0x18] sm:$0xff] }
 0x372   : > { %v1264_v41 = vrot.slane %v1247_v33, 4  ;;  %v1267_v42 = vsel %vm593_vm1, 0.0, %v1266_v34  ;;  %v1269_v43 = vsel %vm593_vm1, 0.0, %v1268_v35  ;;  %v1287_v44 = vperm.slane %v1283_v38, %v2235_v22  ;;  %v1736_v35 = vld [vmem:[#allocation7] sm:$0xff]  ;;  %1503 = vmatpush.bf16.msrb.mxu0 %v1741_v36 }
 0x373   : > { %v1277_v45 = vrot.slane %v1267_v42, 4  ;;  %v1272_v46 = vsel %vm593_vm1, %v1266_v34, %v1247_v33  ;;  %v1289_v47 = vsel %vm593_vm1, %v1288_v39, %v1269_v43  ;;  %v1737_v34 = vld [vmem:[#allocation7 + $0x8] sm:$0xff]  ;;  %v1739_v43 = vld [vmem:[%s2552_s11 + $0x8] sm:$0xff] }
 0x374   : > { %v1265_v48 = vsel %vm593_vm1, 0.0, %v1264_v41  ;;  %v1276_v49 = vperm.slane %v1272_v46, %v2235_v22  ;;  %v1293_v50 = vperm.slane %v1289_v47, %v2235_v22  ;;  %v1308_v51 = vrot.slane %v1287_v44, 4  ;;  %1450 = vmatpush.bf16.msra.mxu3 %v1737_v34  ;;  %v1740_v41 = vld [vmem:[%s2552_s11 + $0x10] sm:$0xff] }
 0x375   : > { %v1278_v52 = vsel %vm593_vm1, %v1277_v45, %v1265_v48  ;;  %v1866_v23 = vpop.eup %1865 }
 0x376   : > { %v1282_v53 = vperm.slane %v1278_v52, %v2235_v22  ;;  %v1296_v54 = vrot.slane %v1276_v49, 4  ;;  %v1309_v55 = vsel %vm593_vm1, %v1293_v50, %v1308_v51  ;;  %v1306_v56 = vrot.slane %v1293_v50, 4  ;;  %1504 = vmatpush.bf16.msrb.mxu0 %v1740_v41  ;;  %v1843_v50 = vld [vmem:[%s2548_s7] ss:$0 sm:$0xff] }
 0x377   : > { %v1317_v57 = vperm.slane %v1309_v55, %v2248_v37  ;;  %v1387_v24 = vmul.f32 32.0, %v1866_v23  ;;  %vm1391_vm7 = vweird.f32 %v1866_v23  ;;  %v1844_v52 = vld [vmem:[%s2549_s8] ss:$0 sm:$0xff] }
 0x378   : > { %v1297_v58 = vsel %vm593_vm1, %v1282_v53, %v1296_v54  ;;  %v1294_v59 = vrot.slane %v1282_v53, 4  ;;  %v1307_v60 = vsel %vm593_vm1, %v1306_v56, %v1287_v44  ;;  %1451 = vmatpush.bf16.msra.mxu3 %v1736_v35 }
 0x379   : > { %v1305_v12 = vperm.slane %v1297_v58, %v2248_v37  ;;  %v1322_v61 = vrot.slane %v1317_v57, 4  ;;  %v1313_v62 = vperm.slane %v1307_v60, %v2248_v37  ;;  %v1388_v25 = vsub.f32 1.0, %v1387_v24  ;;  %v1845_v58 = vld [vmem:[%s2551_s10] ss:$0 sm:$0xff] }
 0x37a   : > { %v1295_v40 = vsel %vm593_vm1, %v1294_v59, %v1276_v49  ;;  %1505 = vmatpush.bf16.msrb.mxu0 %v1739_v43 }
 0x37b   : > { %v1323_v22 = vsel %vm593_vm1, %v1322_v61, %v1305_v12  ;;  %v1301_v63 = vperm.slane %v1295_v40, %v2248_v37  ;;  %v1318_v0 = vrot.slane %v1313_v62, 4  ;;  %v1324_v16 = vrot.slane %v1305_v12, 4  ;;  %v1846_v40 = vld [vmem:[%s2553_s12] ss:$0 sm:$0xff] }
 0x37c   : > { %1331 = vrot.lane.b32.xlu2 %v1323_v22, %s2029_s29  ;;  %v1389_v26 = vmul.f32 %v1866_v23, %v1388_v25 }
 0x37d   : > { %v1320_v1 = vrot.slane %v1301_v63, 4  ;;  %v1319_v2 = vsel %vm593_vm1, %v1318_v0, %v1301_v63  ;;  %v1325_v5 = vsel %vm593_vm1, %v1317_v57, %v1324_v16  ;;  %v1738_v57 = vld [vmem:[%s2552_s11] sm:$0xff] }
 0x37e   : > { %v1390_v27 = vadd.f32 %v1866_v23, %v1389_v26  ;;  %1506 = vmatpush.bf16.msrb.mxu0 %v1738_v57 }
 0x37f   : > { %v1321_v3 = vsel %vm593_vm1, %v1313_v62, %v1320_v1 }
 0x380   : > { %1327 = vrot.lane.b32.xlu1 %v1321_v3, %s2030_s27  ;;  %v2463_v28 = vsel %vm1391_vm7, %v1866_v23, %v1390_v27 }
 0x388   : > { %1335 = vrot.lane.b32.xlu1 %v1325_v5, %s2031_s18  ;;  %s1559_s18 = scalar_lea.hbm %s2556_s15, %s1727_s16 }
 0x389   : > { %s1563_s22 = sshll.u32 %s1559_s18, 4  ;;  %s1564_s22 = int_to_ptr.hbm [resolvable:$true] %s1563_s22 }
 0x38a   : > { %s1945_s25 = sshra.s32 %s1564_s22, 4  ;;  %s1946_s25 = int_to_ptr.hbm [resolvable:$true] %s1945_s25 }
 0x38b   : > { %s1947_s16 = scalar_lea.hbm %s1946_s25, 8  ;;  %p1952_p5 = scmp.lt.s32.totalorder %s1946_s25, %s2556_s15 }
 0x38c   : > { %p1948_p1 = scmp.ne.s32.totalorder %s1946_s25, %s1947_s16  ;;  %p1953_p6 = scmp.lt.s32.totalorder %s1951_s30, %s1947_s16 }
 0x38e   : > { %p1949_p2 = pnand %p1948_p1, %p2153_p4  ;;  %p1954_p7 = por %p1953_p6, %p1952_p5 }
 0x390   : > { %p1950_p3 = pneg %p1949_p2 }
 0x392   : > { %p1955_p9 = pnand %p1954_p7, %p1950_p3 }
 0x3d6   : > { %v1332_v9 = vpop.permute.xlu2 %1331 }
 0x3f2   : > { %v1328_v37 = vpop.permute.xlu1 %1327 }
 0x3f3   : > { %v1338_v8 = vsel %vm1010_vm3, %v1319_v2, %v1328_v37 }
 0x3f4   : > { %v1340_v11 = vsel %vm1339_vm5, %v1338_v8, %v1332_v9 }
 0x3fa   : > { %v1336_v29 = vpop.permute.xlu1 %1335 }
 0x3fb   : > { %v1342_v10 = vsel %vm1341_vm6, %v1340_v11, %v1336_v29 }
 0x3fc   : > { %v1343_v19 = vpack.c.bf16 %v1342_v10, %v1342_v10 }
 0x3fe   : > { %1699 = vmatmul.msk.bf16.vlgmr.msra.gmra.mxu2 %vm565_vm0, %v1343_v19 }
 0x481   : > { %v1376_v18 = vpop.f32.mrf.mxu2 }
 0x482   : > { %v1377_v14 = vadd.f32 %v1842_v13, %v1376_v18 }
 0x484   : > { %v1380_v15 = vadd.f32 %v1377_v14, %v2213_v4 }
 0x486   : > { %v1383_v17 = vsel %vm565_vm0, %v1380_v15, 0.0 }
 0x487   : > { %1384 = vadd.xlane.f32.xlu1 %v1383_v17 }
 0x489   : > { %v1378_v20 = vpop.f32.mrf.mxu2 }
 0x4fa   : > { %v1385_v30 = vpop.xlane.xlu1 %1384 }
 0x4fb   : > { %v1393_v31 = vmul.f32 %v2463_v28, %v1385_v30 }
 0x4fd   : > { %v1394_v32 = vsub.f32 %v1380_v15, %v1393_v31  ;;  %v1847_v15 = vld [vmem:[%s2554_s13] ss:$0 sm:$0xff] }
 0x4ff   : > { %v1395_v33 = vmul.f32 %v1394_v32, %v1394_v32 }
 0x501   : > { %v1396_v4 = vsel %vm565_vm0, %v1395_v33, 0.0 }
 0x502   : > { %1397 = vadd.xlane.f32.xlu2 %v1396_v4 }
 0x575   : > { %v1398_v38 = vpop.xlane.xlu2 %1397 }
 0x576   : > { %v1399_v39 = vmul.f32 %v1398_v38, %v2463_v28 }
 0x578   : > { %v1400_v42 = vadd.f32 1e-05, %v1399_v39 }
 0x57a   : > { %1867 = vrsqrt.f32 %v1400_v42  ;;  %vm1407_vm9 = vweird.f32 %v1400_v42 }
 0x580   : > { %v1868_v44 = vpop.eup %1867 }
 0x581   : > { %v1402_v45 = vmul.f32 %v1868_v44, %v1400_v42  ;;  %vm1408_vm8 = vweird.f32 %v1868_v44 }
 0x582   : > { %vm1409_vm10 = vmor %vm1407_vm9, %vm1408_vm8 }
 0x583   : > { %v1403_v46 = vmul.f32 %v1868_v44, %v1402_v45 }
 0x585   : > { %v1404_v47 = vmul.f32 0.5, %v1403_v46 }
 0x587   : > { %v1405_v48 = vsub.f32 1.5, %v1404_v47 }
 0x589   : > { %v1406_v49 = vmul.f32 %v1868_v44, %v1405_v48 }
 0x58b   : > { %v1410_v51 = vsel %vm1409_vm10, %v1868_v44, %v1406_v49 }
 0x58c   : > { %v1411_v53 = vmul.f32 %v1410_v51, %v1394_v32 }
 0x58e   : > { %v1415_v54 = vmul.f32 %v1843_v50, %v1411_v53 }
 0x590   : > { %v1419_v55 = vadd.f32 %v1844_v52, %v1415_v54 }
 0x592   : > { %v1420_v56 = vpack.c.bf16 %v1419_v55, %v1419_v55 }
 0x594   : > { %1708 = vmatmul.msk.bf16.vlgmr.msra.gmra.mxu3 %vm565_vm0, %v1420_v56 }
 0x617   : > { %v1453_v59 = vpop.f32.mrf.mxu3 }
 0x618   : > { %v1454_v60 = vadd.f32 %v1845_v58, %v1453_v59 }
 0x61a   : > { %v1457_v12 = vmax.f32 %v1454_v60, 0.0 }
 0x61c   : > { %v1458_v61 = vpack.c.bf16 %v1457_v12, %v1457_v12 }
 0x61e   : > { %1725 = vmatmul.msk.bf16.vlgmr.msrb.gmra.mxu0 %vm1495_vm11, %v1458_v61 }
 0x61f   : > { %v1455_v62 = vpop.f32.mrf.mxu3 }
 0x69b   : > { %v1508_v22 = vpop.f32.mrf.mxu0 }
 0x69c   : > { %v1509_v63 = vadd.f32 %v1846_v40, %v1508_v22 }
 0x69e   : > { %v1512_v0 = vmax.f32 %v1509_v63, 0.0 }
 0x6a0   : > { %v1513_v1 = vadd.f32 %v1512_v0, %v1419_v55 }
 0x6a2   : > { %v1516_v2 = vsel %vm565_vm0, %v1513_v1, 0.0 }
 0x6a3   : > { %v1510_v3 = vpop.f32.mrf.mxu0  ;;  %1517 = vadd.xlane.f32.xlu0 %v1516_v2 }
 0x716   : > { %v1518_v16 = vpop.xlane.xlu0 %1517 }
 0x717   : > { %v1519_v5 = vmul.f32 %v1518_v16, %v2463_v28 }
 0x719   : > { %v1520_v6 = vsub.f32 %v1513_v1, %v1519_v5 }
 0x71b   : > { %v1521_v7 = vmul.f32 %v1520_v6, %v1520_v6 }
 0x71d   : > { %v1522_v37 = vsel %vm565_vm0, %v1521_v7, 0.0 }
 0x71e   : > { %1523 = vadd.xlane.f32.xlu0 %v1522_v37 }
 0x791   : > { %v1524_v8 = vpop.xlane.xlu0 %1523 }
 0x792   : > { %v1525_v9 = vmul.f32 %v1524_v8, %v2463_v28 }
 0x794   : > { %v1526_v29 = vadd.f32 1e-05, %v1525_v9 }
 0x796   : > { %1869 = vrsqrt.f32 %v1526_v29  ;;  %vm1533_vm13 = vweird.f32 %v1526_v29 }
 0x79c   : > { %v1870_v11 = vpop.eup %1869 }
 0x79d   : > { %v1528_v10 = vmul.f32 %v1870_v11, %v1526_v29  ;;  %vm1534_vm12 = vweird.f32 %v1870_v11 }
 0x79e   : > { %vm1535_vm14 = vmor %vm1533_vm13, %vm1534_vm12 }
 0x79f   : > { %v1529_v19 = vmul.f32 %v1870_v11, %v1528_v10 }
 0x7a1   : > { %v1530_v13 = vmul.f32 0.5, %v1529_v19 }
 0x7a3   : > { %v1531_v18 = vsub.f32 1.5, %v1530_v13 }
 0x7a5   : > { %v1532_v14 = vmul.f32 %v1870_v11, %v1531_v18 }
 0x7a7   : > { %v1536_v17 = vsel %vm1535_vm14, %v1870_v11, %v1532_v14 }
 0x7a8   : > { %v1537_v20 = vmul.f32 %v1536_v17, %v1520_v6 }
 0x7aa   : > { %v1541_v23 = vmul.f32 %v1847_v15, %v1537_v20 }
 0x7ac   : > { %v1545_v24 = vadd.f32 %v1848_v21, %v1541_v23 }
 0x7ae   : > { %1546 = vst.msk [vmem:[%s533_s20] sm:$0xff] %vm565_vm0, %v1545_v24 }
 0x7af   : > { %1958 = shalt.err (!%p1955_p9)
}
 0x7b0   : > { %1750 = dma.vmem_to_hbm [thread:$0]  (%p2153_p4), %s1562_s21, 128, %s1564_s22, %s1548_s17  }
 0x7b1 PF: > { %s2577_s23 = sld [smem:[#allocation16_spill]] }
 0x7b2   : > { %s2578_s26 = sld [smem:[#allocation13_spill]] }
 0x7b7   : > { %p1767_p10 = scmp.ge.s32.totalorder %s2577_s23, 2 }
 0x7b8   : > { %s1575_s20 = sand.u32 1, %s2578_s26  }
 0x7b9   : > { %p1760_p11 = pnand %p1767_p10, %p2160_p8  ;;  %s1576_s29 = scalar_lea.sflag [#allocation6], %s1575_s20 }
 0x7bb   : > { %p1761_p12 = pneg %p1760_p11 }
 0x7bd   : > { %1992 = dma.done.wait (%p1761_p12), %s1576_s29, 128  }
 0x7be   : > { %1994 = vsyncadd (%p1761_p12), %s1576_s29, 4294967168  ;;  %s30_s23 = sadd.s32 1, %s2577_s23   ;;  %s2580_s25 = sld [smem:[#allocation14_spill]] }
 0x7bf   : > { %p27_p13 = scmp.ge.s32.totalorder %s30_s23, 4   ;;  %s2581_s20 = sld [smem:[#allocation19_spill]] }
 0x7c0   : > { %s2582_s21 = sld [smem:[#allocation15_spill]]  ;;  %s2584_s18 = smov %s2001_s19 }
 0x7c1   : > { %s2583_s22 = sld [smem:[#allocation17_spill]]  ;;  %29 = sbr.rel (!%p27_p13) target bundleno = 8 (0x8), region = 128 }
 0x7c4   : > { %s2585_s19 = smov %s2580_s25 }
 0x7c6   :  { %1582 = vsyncpa [#allocation5], 1 }
 0x7c7   :  { %1584 = vsyncpa [#allocation5 + $0x1], 1 }
 0x7c8   :  { %1585 = vsyncpa [#allocation8], 1 }
 0x7c9   :  { %1586 = vsyncpa [#allocation6], 1 }
 0x7ca   :  { %1588 = vsyncpa [#allocation6 + $0x1], 1 }

</bundles_post_ra>
